<compile_context>
chip_gen: v7x
topology: tpu7x:2x2x1
jax: 0.10.0
libtpu: 0.0.40
codegen_flags: <defaults>
</compile_context>

<pallas_src>
import functools
import math

import numpy as np

import jax
import jax.numpy as jnp
from jax import lax
from jax.experimental import pallas as pl
from jax.experimental.pallas import tpu as pltpu

KHS = 3                      # kernel_half_size
KS = 2 * KHS + 1             # 7
SIGMA = 1.6
PREC = lax.Precision.HIGHEST

EXTINCT_SCALE = 5.0
TOON_HARDNESS = 0.1
SMOKE_COLOR = 0.95


# ----------------------------------------------------------------------------
# Parameter construction (deterministic, mirrors GaussianSmoothing.__init__)
# ----------------------------------------------------------------------------
def _gauss_1d(ks=KS, sigma=SIGMA):
    ax = np.arange(ks, dtype=np.float64)
    mean = (ks - 1) / 2.0
    g = (1.0 / (sigma * math.sqrt(2.0 * math.pi))) * np.exp(
        -(((ax - mean) / sigma) ** 2) / 2.0)
    return (g / g.sum()).astype(np.float32)


_G1 = [float(v) for v in _gauss_1d()]        # taps baked in as constants


def _gauss_kernel_3d():
    g = _gauss_1d()
    return (g[:, None, None] * g[None, :, None] * g[None, None, :]).astype(
        np.float32)


def _banded_trunc(g1, n, khs=KHS):
    # (n, n) banded matrix with the zero padding folded in:  row @ M  (or
    # M @ col-block, M is symmetric) performs the 1-D Gaussian taps.
    m = np.zeros((n, n), np.float32)
    for i in range(n):
        for j in range(max(0, i - khs), min(n, i + khs + 1)):
            m[i, j] = g1[i - j + khs]
    return m


def _cdiff_matrix(n):
    # column j: out[j] = sum_k in[k] * m[k, j]   (order-2 torchGrad3D stencil)
    m = np.zeros((n, n), np.float32)
    for j in range(1, n - 1):
        m[j - 1, j] = -0.5
        m[j + 1, j] = 0.5
    m[0, 0] = -1.0
    m[1, 0] = 1.0
    m[n - 2, n - 1] = -1.0
    m[n - 1, n - 1] = 1.0
    return m


def _divisor_tile(n, target=8):
    for t in range(min(target, n), 0, -1):
        if n % t == 0:
            return t
    return 1


def _compiler_params(semantics, vmem_bytes=None):
    kwargs = {}
    if vmem_bytes is not None and vmem_bytes > (16 << 20):
        # raise v5e's 16 MiB default scoped-VMEM limit for bigger shapes,
        # but stay within v7x's 64 MiB physical VMEM.
        kwargs["vmem_limit_bytes"] = int(min(vmem_bytes, 64 << 20))
    return pltpu.CompilerParams(dimension_semantics=semantics, **kwargs)


# ----------------------------------------------------------------------------
# Kernel 1: separable 7x7x7 Gaussian (zero padding) over depth slabs.
#   grid = (B, n_slabs + 1); the last grid step only flushes the final slab.
#   Each input slab is read once; the +/-KHS z halo is carried in scratch.
# ----------------------------------------------------------------------------
def _gauss_kernel(x_ref, mh_ref, mw_ref, o_ref, prev_ref, tail_ref, win_ref,
                  *, td):
    s = pl.program_id(1)
    flush = pl.num_programs(1) - 1               # == number of depth slabs
    H = o_ref.shape[2]
    W = o_ref.shape[3]
    # fuse the module's d = (x + 1) / 2 rescale into the kernel
    slab = (x_ref[0] + 1.0) * 0.5                # (td, H, W)

    @pl.when(s == 0)
    def _start():
        tail_ref[...] = jnp.zeros_like(tail_ref)

    @pl.when(s > 0)
    def _emit():
        # output slab o = s - 1 needs planes [o*td - 3, o*td + td + 3):
        #   [tail of slab o-1 | slab o (carried in prev_ref) | head of slab o+1]
        # On the flush step the future halo lies beyond the volume -> zeros.
        valid = (s < flush).astype(jnp.float32)
        win_ref[0:KHS] = tail_ref[...]
        win_ref[KHS:KHS + td] = prev_ref[...]
        win_ref[KHS + td:] = slab[:KHS] * valid

        # z taps: compile-time constants, unrolled (343 taps -> 3 x 7 taps)
        zacc = _G1[0] * win_ref[0:td]
        for k in range(1, KS):
            zacc = zacc + _G1[k] * win_ref[k:k + td]

        # W taps: one batched MXU matmul over the whole slab
        if H % 8 == 0:
            ws = jnp.dot(zacc.reshape(td * H, W), mw_ref[...],
                         preferred_element_type=jnp.float32,
                         precision=PREC).reshape(td, H, W)
        else:
            ws = jnp.stack(
                [jnp.dot(zacc[t], mw_ref[...],
                         preferred_element_type=jnp.float32, precision=PREC)
                 for t in range(td)], axis=0)

        # H taps: per-plane (td is small, static)
        for t in range(td):
            o_ref[0, t] = jnp.dot(mh_ref[...], ws[t],
                                  preferred_element_type=jnp.float32,
                                  precision=PREC)

        tail_ref[...] = prev_ref[td - KHS:]

    prev_ref[...] = slab


def gaussian_smooth_pallas(x0):
    # x0: (B, D, H, W) raw input in [-1, 1]; returns smoothed (x0 + 1) / 2.
    B, D, H, W = x0.shape
    td = max(KHS, min(8, D))
    nd = pl.cdiv(D, td)
    dp = nd * td
    if dp > D:
        # pad depth with x = -1  (i.e. density 0) so zero-pad semantics hold
        x0 = jnp.pad(x0, ((0, 0), (0, dp - D), (0, 0), (0, 0)),
                     constant_values=-1.0)
    g1 = _gauss_1d()
    mh = jnp.asarray(_banded_trunc(g1, H))       # (H, H)  symmetric
    mw = jnp.asarray(_banded_trunc(g1, W))       # (W, W)  symmetric

    plane = H * W * 4
    vmem_hint = plane * (9 * td + 24) + 4 * (H * H + W * W)

    out = pl.pallas_call(
        functools.partial(_gauss_kernel, td=td),
        out_shape=jax.ShapeDtypeStruct((B, dp, H, W), jnp.float32),
        grid=(B, nd + 1),
        in_specs=[
            pl.BlockSpec((1, td, H, W),
                         lambda b, s: (b, jnp.minimum(s, nd - 1), 0, 0)),
            pl.BlockSpec((H, H), lambda b, s: (0, 0)),
            pl.BlockSpec((W, W), lambda b, s: (0, 0)),
        ],
        out_specs=pl.BlockSpec((1, td, H, W),
                               lambda b, s: (b, jnp.maximum(s - 1, 0), 0, 0)),
        scratch_shapes=[
            pltpu.VMEM((td, H, W), jnp.float32),             # previous slab
            pltpu.VMEM((KHS, H, W), jnp.float32),            # tail of slab-2
            pltpu.VMEM((td + 2 * KHS, H, W), jnp.float32),   # assembled window
        ],
        compiler_params=_compiler_params(("parallel", "arbitrary"), vmem_hint),
    )(x0, mh, mw)
    return out[:, :D] if dp > D else out


# ----------------------------------------------------------------------------
# Kernel 2: fused gradient + surface_render streaming depth scan.
#   grid = (B, n_z_slabs); depth flip folded into the index maps; the gradient
#   (-torchGrad3D/dx) is computed on the fly (order-2 stencils) so the
#   (B,3,D,H,W) gradient volume never exists in HBM; the cumsum / trapezoid
#   integration carries live in VMEM scratch; the normal/shade/toon math runs
#   once at the last depth step.
# ----------------------------------------------------------------------------
def _render_kernel(slab_ref, low_ref, mdyt_ref, mdx_ref, o_ref,
                   x_run, t_prev, d_prev, g_prev, acc_g, acc_a, *,
                   tz, dx, inv_dx, c, toon_color, contour_thresh,
                   light_dir, toon_hardness, smoke_color):
    s = pl.program_id(1)
    ns = pl.num_programs(1)
    first_slab = s == 0
    last_slab = s == ns - 1

    @pl.when(first_slab)
    def _init():
        x_run[...] = jnp.zeros_like(x_run)
        t_prev[...] = jnp.ones_like(t_prev)     # makes the generic step formula
        d_prev[...] = jnp.zeros_like(d_prev)    # reproduce the k==0 init exactly
        g_prev[...] = jnp.zeros_like(g_prev)
        acc_g[...] = jnp.zeros_like(acc_g)
        acc_a[...] = jnp.zeros_like(acc_a)

    # carried state -> registers for the unrolled slab loop
    x = x_run[...]
    tp = t_prev[...]
    dprev = d_prev[...]
    gprev = g_prev[...]
    ag = acc_g[...]
    aa = acc_a[...]

    mdyt = mdyt_ref[...]
    mdx = mdx_ref[...]

    # slab planes are stored in ascending original-z order; the render scan
    # (torch.flip(d, [2])) walks them in descending order.
    for t in reversed(range(tz)):
        cur = slab_ref[0, t]                                      # (H, W)
        d_dn = slab_ref[0, t - 1] if t > 0 else low_ref[0, 0]     # orig z-1
        d_up = dprev                                              # orig z+1

        # -torchGrad3D(d_s, order=2) / dx, computed on the fly
        gz = (d_up - d_dn) * 0.5
        if t == tz - 1:                                 # top plane of slab
            gz = jnp.where(first_slab, cur - d_dn, gz)  # one-sided @ z = D-1
        if t == 0:                                      # bottom plane of slab
            gz = jnp.where(last_slab, d_up - cur, gz)   # one-sided @ z = 0
        gx = jnp.dot(cur, mdx, preferred_element_type=jnp.float32,
                     precision=PREC)
        gy = jnp.dot(mdyt, cur, preferred_element_type=jnp.float32,
                     precision=PREC)
        g = jnp.stack([gx, gy, gz], axis=0) * (-inv_dx)           # (3, H, W)

        gp = gprev
        if t == tz - 1:
            # very first plane of the scan: trapezoid with gp == g reproduces
            # the (1 - t0) / (x0 + 1e-7) * v0 initial term exactly.
            gp = jnp.where(first_slab, g, gp)

        x_new = x + cur * dx
        t_cur = (x_new * c + 1.0) * jnp.exp(-c * x_new)
        dt = tp - t_cur
        dxq = x_new - x + 1e-7
        # exact divide kept (dxq ~ 1e-7 possible; normal is cancellation-
        # sensitive, per review) — the rsqrt below covers the EUP win.
        ag = ag + (dt / dxq)[None] * (gp + g) * 0.5
        aa = aa + dt
        x = x_new
        tp = t_cur
        gprev = g
        dprev = cur

    x_run[...] = x
    t_prev[...] = tp
    d_prev[...] = dprev
    g_prev[...] = gprev
    acc_g[...] = ag
    acc_a[...] = aa

    @pl.when(last_slab)
    def _finalize():
        a = jnp.clip(aa, 0.0, 1.0)
        inv_norm = lax.rsqrt(jnp.sum(ag * ag, axis=0) + 1e-7)
        igrad = ag * inv_norm[None]
        one_m_a = 1.0 - a
        # bgs = [0, 0, 1] -> only the z component matters for the contour.
        nm_z = one_m_a + a * igrad[2]
        s_img = jnp.clip(nm_z, 0.0, contour_thresh) * (1.0 / contour_thresh)
        lx, ly, lz = light_dir
        nm2x = one_m_a * lx + a * igrad[0]
        nm2y = one_m_a * ly + a * igrad[1]
        nm2z = one_m_a * lz + a * igrad[2]
        sh = jnp.clip(lx * nm2x + ly * nm2y + lz * nm2z, 0.0, 1.0)
        tt = (sh - (0.5 - toon_hardness)) / (2.0 * toon_hardness)
        toon = jnp.where(tt < 0.0, 0.0,
                         jnp.where(tt <= 1.0,
                                   3.0 * tt * tt - 2.0 * tt * tt * tt, 1.0))
        t_img = one_m_a + a * (toon_color + (smoke_color - toon_color) * toon)
        out = (1.0 - s_img) * s_img + s_img * t_img     # faithful to the module
        o_ref[...] = jnp.stack([s_img * 2.0 - 1.0,
                                t_img * 2.0 - 1.0,
                                sh * 2.0 - 1.0,
                                out * 2.0 - 1.0], axis=0)[None]


def fused_grad_render_pallas(dd, *, toon_color, contour_thresh, light_dir, dx):
    # dd: (B, D, H, W) rotated smoothed density -> 4 images (B, 1, H, W)
    B, D, H, W = dd.shape
    smoke = SMOKE_COLOR
    toon_color = float(toon_color)
    contour_thresh = float(contour_thresh)
    if toon_color >= smoke:
        toon_color = smoke - 0.01
    if contour_thresh >= 1:
        contour_thresh = 0.99

    tz = _divisor_tile(D, 8)
    nz = D // tz
    mdx = jnp.asarray(_cdiff_matrix(W))            # (W, W)
    mdyt = jnp.asarray(_cdiff_matrix(H).T)         # (H, H)

    plane = H * W * 4
    vmem_hint = plane * (2 * tz + 2 + 8 + 10) + 4 * (H * H + W * W)

    kern = functools.partial(
        _render_kernel, tz=tz, dx=float(dx), inv_dx=1.0 / float(dx),
        c=EXTINCT_SCALE, toon_color=toon_color, contour_thresh=contour_thresh,
        light_dir=tuple(float(v) for v in light_dir),
        toon_hardness=TOON_HARDNESS, smoke_color=smoke)

    out4 = pl.pallas_call(
        kern,
        out_shape=jax.ShapeDtypeStruct((B, 4, H, W), jnp.float32),
        grid=(B, nz),
        in_specs=[
            # depth slab, flip folded into the index map (no HBM copy)
            pl.BlockSpec((1, tz, H, W), lambda b, s: (b, nz - 1 - s, 0, 0)),
            # one extra plane just below the slab (z-neighbour for the stencil)
            pl.BlockSpec((1, 1, H, W),
                         lambda b, s: (b, jnp.maximum(D - (s + 1) * tz - 1, 0),
                                       0, 0)),
            pl.BlockSpec((H, H), lambda b, s: (0, 0)),
            pl.BlockSpec((W, W), lambda b, s: (0, 0)),
        ],
        out_specs=pl.BlockSpec((1, 4, H, W), lambda b, s: (b, 0, 0, 0)),
        scratch_shapes=[
            pltpu.VMEM((H, W), jnp.float32),       # x_run
            pltpu.VMEM((H, W), jnp.float32),       # t_prev
            pltpu.VMEM((H, W), jnp.float32),       # d_prev
            pltpu.VMEM((3, H, W), jnp.float32),    # g_prev
            pltpu.VMEM((3, H, W), jnp.float32),    # acc_g
            pltpu.VMEM((H, W), jnp.float32),       # acc_a
        ],
        compiler_params=_compiler_params(("parallel", "arbitrary"), vmem_hint),
    )(dd, dd, mdyt, mdx)
    return out4[:, 0:1], out4[:, 1:2], out4[:, 2:3], out4[:, 3:4]


# ----------------------------------------------------------------------------
# rotate() / rotate_grad() glue — direct translation of the PyTorch tables.
# The kernel path only needs rotate() (the gradient is computed in the rotated
# frame inside the fused render kernel); rotate_grad() is kept for the
# pure-JAX reference.
# ----------------------------------------------------------------------------
def rotate(d, dr):
    f = lambda a, ax: jnp.flip(a, axis=ax)
    sw = jnp.swapaxes
    table = {
        'zp': lambda: d,
        'zn': lambda: f(f(d, 2), 4),
        'xp': lambda: f(sw(d, 2, 4), 4),
        'xn': lambda: f(sw(d, 2, 4), 2),
        'yp': lambda: f(sw(d, 2, 3), 3),
        'yn': lambda: f(sw(d, 2, 3), 2),
        'zp1': lambda: f(f(d, 3), 4),
        'zp2': lambda: f(sw(d, 3, 4), 3),
        'zp3': lambda: f(sw(f(f(d, 3), 4), 3, 4), 3),
        'zn1': lambda: f(f(f(f(d, 2), 4), 3), 4),
        'zn2': lambda: f(sw(f(f(d, 2), 4), 3, 4), 3),
        'zn3': lambda: f(sw(f(f(f(f(d, 2), 4), 3), 4), 3, 4), 3),
        'xp1': lambda: f(f(f(sw(d, 2, 4), 4), 3), 4),
        'xp2': lambda: f(sw(f(sw(d, 2, 4), 4), 3, 4), 3),
        'xp3': lambda: f(sw(f(f(f(sw(d, 2, 4), 4), 3), 4), 3, 4), 3),
        'xn1': lambda: f(f(f(sw(d, 2, 4), 2), 3), 4),
        'xn2': lambda: f(sw(f(sw(d, 2, 4), 2), 3, 4), 3),
        'xn3': lambda: f(sw(f(f(f(sw(d, 2, 4), 2), 3), 4), 3, 4), 3),
        'yp1': lambda: f(f(f(sw(d, 2, 3), 3), 3), 4),
        'yp2': lambda: f(sw(f(sw(d, 2, 3), 3), 3, 4), 3),
        'yp3': lambda: f(sw(f(f(f(sw(d, 2, 3), 3), 3), 4), 3, 4), 3),
        'yn1': lambda: f(f(f(sw(d, 2, 3), 2), 3), 4),
        'yn2': lambda: f(sw(f(sw(d, 2, 3), 2), 3, 4), 3),
        'yn3': lambda: f(sw(f(f(f(sw(d, 2, 3), 2), 3), 4), 3, 4), 3),
    }
    return table[dr]()


def rotate_grad(g, dr):
    rg = rotate(g, dr)
    comps = {
        'zp': (rg[:, 0], rg[:, 1], rg[:, 2]),
        'zn': (-rg[:, 0], rg[:, 1], -rg[:, 2]),
        'xp': (-rg[:, 2], rg[:, 1], rg[:, 0]),
        'xn': (rg[:, 2], rg[:, 1], -rg[:, 0]),
        'yp': (rg[:, 0], -rg[:, 2], rg[:, 1]),
        'yn': (rg[:, 0], rg[:, 2], -rg[:, 1]),
    }[dr]
    return jnp.stack(comps, axis=1)


# ----------------------------------------------------------------------------
# Full forward pass (equivalent of DiffPatchSketchRender.forward)
# ----------------------------------------------------------------------------
def diff_patch_sketch_render(x, toon_color=0.8, contour_thresh=0.8,
                             light_dir=(0.5774, 0.5774, 0.5774),
                             dirs=("zp",), dx=1.0):
    # x: (B, 1, D, H, W) float32 in [-1, 1]
    # TODO(synk): patch_sketch_info / upsample_to paths not implemented.
    d_s = gaussian_smooth_pallas(x[:, 0])              # (B, D, H, W) smoothed
    outs = []
    for dr in dirs:
        # rotate() is pure layout glue (XLA transpose/flip, identity for 'zp').
        # The gradient is computed inside the fused render kernel directly in
        # the rotated frame, which equals rotate_grad(-torchGrad3D(d_s)/dx, dr)
        # (sign/permutation consistency incl. one-sided boundary rows), so the
        # (B, 3, D, H, W) gradient volume never touches HBM.
        dd = rotate(d_s[:, None], dr)[:, 0]
        outs.append(fused_grad_render_pallas(
            dd, toon_color=toon_color, contour_thresh=contour_thresh,
            light_dir=light_dir, dx=dx))
    return outs


# ----------------------------------------------------------------------------
# Pure-JAX reference (mirrors the PyTorch module; used for a sanity check)
# ----------------------------------------------------------------------------
def _grad3d_ref(ds):
    x = ds[:, 0]
    dudx = jnp.concatenate(
        [x[:, :, :, 1:2] - x[:, :, :, 0:1],
         (x[:, :, :, 2:] - x[:, :, :, :-2]) / 2,
         x[:, :, :, -1:] - x[:, :, :, -2:-1]], axis=3)
    dudy = jnp.concatenate(
        [x[:, :, 1:2] - x[:, :, 0:1],
         (x[:, :, 2:] - x[:, :, :-2]) / 2,
         x[:, :, -1:] - x[:, :, -2:-1]], axis=2)
    dudz = jnp.concatenate(
        [x[:, 1:2] - x[:, 0:1],
         (x[:, 2:] - x[:, :-2]) / 2,
         x[:, -1:] - x[:, -2:-1]], axis=1)
    return jnp.stack([dudx, dudy, dudz], axis=1)


def _integrate_ref(t, v, x=None):
    if x is not None:
        dxq = x[:, :, 1:] - x[:, :, :-1] + 1e-7
        return ((1 - t[:, :, 0]) / (x[:, :, 0] + 1e-7) * v[:, :, 0] +
                jnp.sum((t[:, :, :-1] - t[:, :, 1:]) / dxq *
                        (v[:, :, :-1] + v[:, :, 1:]) * 0.5, axis=2))
    return ((1 - t[:, :, 0]) * v[:, :, 0] +
            jnp.sum((t[:, :, :-1] - t[:, :, 1:]) *
                    (v[:, :, :-1] + v[:, :, 1:]) * 0.5, axis=2))


def _surface_render_ref(d, grad, toon_color, contour_thresh, light_dir, dx):
    c = EXTINCT_SCALE
    smoke_color = SMOKE_COLOR
    if toon_color >= smoke_color:
        toon_color = smoke_color - 0.01
    if contour_thresh >= 1:
        contour_thresh = 0.99
    d = jnp.flip(d, axis=2)
    grad = jnp.flip(grad, axis=2)
    x = jnp.cumsum(d * dx, axis=2)
    t = (x * c + 1.0) * jnp.exp(-c * x)
    grads = _integrate_ref(t, grad, x)
    igrad = grads / jnp.sqrt(jnp.sum(grads ** 2, axis=1) + 1e-7)[:, None]
    a = jnp.clip(_integrate_ref(t, jnp.ones_like(d)), 0.0, 1.0)
    bgs = jnp.array([0.0, 0.0, 1.0], jnp.float32).reshape(1, 3, 1, 1)
    l = jnp.array(light_dir, jnp.float32).reshape(1, 3, 1, 1)
    nm = (1 - a) * bgs + a * igrad
    s = jnp.clip(nm[:, 2:3], 0.0, contour_thresh) / contour_thresh
    nm2 = (1 - a) * l + a * igrad
    sh = jnp.clip(jnp.sum(l * nm2, axis=1), 0.0, 1.0)[:, None]

    def smoothclamp(v, mi, mx):
        tt = (v - mi) / (mx - mi)
        return jnp.where(tt < 0, 0.0,
                         jnp.where(tt <= 1, 3 * tt ** 2 - 2 * tt ** 3, 1.0))

    tn = smoothclamp(sh, 0.5 - TOON_HARDNESS, 0.5 + TOON_HARDNESS)
    t2 = 1 - a + a * (toon_color + (smoke_color - toon_color) * tn)
    out = (1 - s) * s + s * t2
    return (s * 2 - 1, t2 * 2 - 1, sh * 2 - 1, out * 2 - 1)


def reference_forward(x, toon_color=0.8, contour_thresh=0.8,
                      light_dir=(0.5774, 0.5774, 0.5774),
                      dirs=("zp",), dx=1.0):
    d = (x + 1.0) * 0.5
    k3 = jnp.asarray(_gauss_kernel_3d())
    ds = lax.conv_general_dilated(
        d, k3[None, None], (1, 1, 1), [(KHS, KHS)] * 3,
        dimension_numbers=('NCDHW', 'OIDHW', 'NCDHW'),
        precision=lax.Precision.HIGHEST)
    grad = -_grad3d_ref(ds) / dx
    outs = []
    for dr in dirs:
        dd = rotate(ds, dr)
        gg = rotate_grad(grad, dr)
        outs.append(_surface_render_ref(dd, gg, toon_color, contour_thresh,
                                        light_dir, dx))
    return outs


if __name__ == "__main__":
    key = jax.random.PRNGKey(0)
    B, D, H, W = 2, 16, 16, 16
    x = jax.random.uniform(key, (B, 1, D, H, W), jnp.float32, -1.0, 1.0)

    dirs = ("zp", "xp")                 # exercise identity + transposed path
    outs = diff_patch_sketch_render(x, dirs=dirs)
    for tup in outs:
        for arr in tup:
            jax.block_until_ready(arr)

    refs = reference_forward(x, dirs=dirs)
    for ktup, rtup in zip(outs, refs):
        for ka, ra in zip(ktup, rtup):
            np.testing.assert_allclose(np.asarray(ka), np.asarray(ra),
                                       rtol=2e-3, atol=2e-3)

    print("KERNEL_OK")
</pallas_src>

<mosaic_0001>
module attributes {stable_mosaic.version = 11 : i64} {
  func.func @_gauss_kernel(%arg0: i32, %arg1: i32, %arg2: memref<1x8x16x16xf32, #tpu.memory_space<vmem>>, %arg3: memref<16x16xf32, #tpu.memory_space<vmem>>, %arg4: memref<16x16xf32, #tpu.memory_space<vmem>>, %arg5: memref<1x8x16x16xf32, #tpu.memory_space<vmem>>, %arg6: memref<8x16x16xf32, #tpu.memory_space<vmem>>, %arg7: memref<3x16x16xf32, #tpu.memory_space<vmem>>, %arg8: memref<14x16x16xf32, #tpu.memory_space<vmem>>) attributes {dimension_semantics = [#tpu.dimension_semantics<parallel>, #tpu.dimension_semantics<arbitrary>], iteration_bounds = array<i64: 2, 3>, scalar_prefetch = 0 : i64, scratch_operands = 3 : i64, tpu.core_type = #tpu.core_type<tc>, window_params = [{transform_indices = @transform_0, window_bounds = array<i64: 1, 8, 16, 16>}, {pipeline_mode = #tpu.pipeline_mode<synchronous>, transform_indices = @transform_1, window_bounds = array<i64: 16, 16>}, {pipeline_mode = #tpu.pipeline_mode<synchronous>, transform_indices = @transform_2, window_bounds = array<i64: 16, 16>}, {transform_indices = @transform_3, window_bounds = array<i64: 1, 8, 16, 16>}]} {
    %c0 = arith.constant 0 : index
    %c0_0 = arith.constant 0 : index
    %c0_1 = arith.constant 0 : index
    %c0_2 = arith.constant 0 : index
    %0 = vector.load %arg2[%c0, %c0_0, %c0_1, %c0_2] : memref<1x8x16x16xf32, #tpu.memory_space<vmem>>, vector<1x8x16x16xf32>
    %1 = vector.shape_cast %0 : vector<1x8x16x16xf32> to vector<8x16x16xf32>
    %cst = arith.constant 1.000000e+00 : f32
    %2 = vector.broadcast %cst : f32 to vector<8x16x16xf32>
    %3 = arith.addf %1, %2 : vector<8x16x16xf32>
    %cst_3 = arith.constant 5.000000e-01 : f32
    %4 = vector.broadcast %cst_3 : f32 to vector<8x16x16xf32>
    %5 = arith.mulf %3, %4 : vector<8x16x16xf32>
    %c0_i32 = arith.constant 0 : i32
    %6 = arith.cmpi eq, %arg1, %c0_i32 : i32
    %7 = arith.extui %6 : i1 to i32
    %c0_i32_4 = arith.constant 0 : i32
    %8 = arith.cmpi ne, %7, %c0_i32_4 : i32
    scf.if %8 {
      %cst_10 = arith.constant 0.000000e+00 : f32
      %13 = vector.broadcast %cst_10 : f32 to vector<3x16x16xf32>
      %c0_11 = arith.constant 0 : index
      %c0_12 = arith.constant 0 : index
      %c0_13 = arith.constant 0 : index
      %14 = vector.load %arg7[%c0_11, %c0_12, %c0_13] : memref<3x16x16xf32, #tpu.memory_space<vmem>>, vector<3x16x16xf32>
      tpu.vector_store %arg7[%c0_11, %c0_12, %c0_13], %13 {strides = array<i32>} : memref<3x16x16xf32, #tpu.memory_space<vmem>>, vector<3x16x16xf32>,
    } else {
    }
    %c0_i32_5 = arith.constant 0 : i32
    %9 = arith.cmpi sgt, %arg1, %c0_i32_5 : i32
    %10 = arith.extui %9 : i1 to i32
    %c0_i32_6 = arith.constant 0 : i32
    %11 = arith.cmpi ne, %10, %c0_i32_6 : i32
    scf.if %11 {
      %c2_i32 = arith.constant 2 : i32
      %13 = arith.cmpi slt, %arg1, %c2_i32 : i32
      %14 = arith.extui %13 : i1 to i32
      %15 = arith.sitofp %14 : i32 to f32
      %c0_10 = arith.constant 0 : index
      %c0_11 = arith.constant 0 : index
      %c0_12 = arith.constant 0 : index
      %16 = vector.load %arg7[%c0_10, %c0_11, %c0_12] : memref<3x16x16xf32, #tpu.memory_space<vmem>>, vector<3x16x16xf32>
      %c0_13 = arith.constant 0 : index
      %c0_14 = arith.constant 0 : index
      %c0_15 = arith.constant 0 : index
      %17 = vector.load %arg8[%c0_13, %c0_14, %c0_15] : memref<14x16x16xf32, #tpu.memory_space<vmem>>, vector<3x16x16xf32>
      tpu.vector_store %arg8[%c0_13, %c0_14, %c0_15], %16 {strides = array<i32>} : memref<14x16x16xf32, #tpu.memory_space<vmem>>, vector<3x16x16xf32>,
      %c0_16 = arith.constant 0 : index
      %c0_17 = arith.constant 0 : index
      %c0_18 = arith.constant 0 : index
      %18 = vector.load %arg6[%c0_16, %c0_17, %c0_18] : memref<8x16x16xf32, #tpu.memory_space<vmem>>, vector<8x16x16xf32>
      %c3 = arith.constant 3 : index
      %c0_19 = arith.constant 0 : index
      %c0_20 = arith.constant 0 : index
      %19 = vector.load %arg8[%c3, %c0_19, %c0_20] : memref<14x16x16xf32, #tpu.memory_space<vmem>>, vector<8x16x16xf32>
      tpu.vector_store %arg8[%c3, %c0_19, %c0_20], %18 {strides = array<i32>} : memref<14x16x16xf32, #tpu.memory_space<vmem>>, vector<8x16x16xf32>,
      %20 = vector.extract_strided_slice %5 {offsets = [0, 0, 0], sizes = [3, 16, 16], strides = [1, 1, 1]} : vector<8x16x16xf32> to vector<3x16x16xf32>
      %21 = vector.broadcast %15 : f32 to vector<3x16x16xf32>
      %22 = arith.mulf %20, %21 : vector<3x16x16xf32>
      %c11 = arith.constant 11 : index
      %c0_21 = arith.constant 0 : index
      %c0_22 = arith.constant 0 : index
      %23 = vector.load %arg8[%c11, %c0_21, %c0_22] : memref<14x16x16xf32, #tpu.memory_space<vmem>>, vector<3x16x16xf32>
      tpu.vector_store %arg8[%c11, %c0_21, %c0_22], %22 {strides = array<i32>} : memref<14x16x16xf32, #tpu.memory_space<vmem>>, vector<3x16x16xf32>,
      %c0_23 = arith.constant 0 : index
      %c0_24 = arith.constant 0 : index
      %c0_25 = arith.constant 0 : index
      %24 = vector.load %arg8[%c0_23, %c0_24, %c0_25] : memref<14x16x16xf32, #tpu.memory_space<vmem>>, vector<8x16x16xf32>
      %cst_26 = arith.constant 0.0441465452 : f32
      %25 = vector.broadcast %cst_26 : f32 to vector<8x16x16xf32>
      %26 = arith.mulf %25, %24 : vector<8x16x16xf32>
      %c1 = arith.constant 1 : index
      %c0_27 = arith.constant 0 : index
      %c0_28 = arith.constant 0 : index
      %27 = vector.load %arg8[%c1, %c0_27, %c0_28] : memref<14x16x16xf32, #tpu.memory_space<vmem>>, vector<8x16x16xf32>
      %cst_29 = arith.constant 0.11722289 : f32
      %28 = vector.broadcast %cst_29 : f32 to vector<8x16x16xf32>
      %29 = arith.mulf %28, %27 : vector<8x16x16xf32>
      %30 = arith.addf %26, %29 : vector<8x16x16xf32>
      %c2 = arith.constant 2 : index
      %c0_30 = arith.constant 0 : index
      %c0_31 = arith.constant 0 : index
      %31 = vector.load %arg8[%c2, %c0_30, %c0_31] : memref<14x16x16xf32, #tpu.memory_space<vmem>>, vector<8x16x16xf32>
      %cst_32 = arith.constant 0.210611388 : f32
      %32 = vector.broadcast %cst_32 : f32 to vector<8x16x16xf32>
      %33 = arith.mulf %32, %31 : vector<8x16x16xf32>
      %34 = arith.addf %30, %33 : vector<8x16x16xf32>
      %c3_33 = arith.constant 3 : index
      %c0_34 = arith.constant 0 : index
      %c0_35 = arith.constant 0 : index
      %35 = vector.load %arg8[%c3_33, %c0_34, %c0_35] : memref<14x16x16xf32, #tpu.memory_space<vmem>>, vector<8x16x16xf32>
      %cst_36 = arith.constant 0.256038338 : f32
      %36 = vector.broadcast %cst_36 : f32 to vector<8x16x16xf32>
      %37 = arith.mulf %36, %35 : vector<8x16x16xf32>
      %38 = arith.addf %34, %37 : vector<8x16x16xf32>
      %c4 = arith.constant 4 : index
      %c0_37 = arith.constant 0 : index
      %c0_38 = arith.constant 0 : index
      %39 = vector.load %arg8[%c4, %c0_37, %c0_38] : memref<14x16x16xf32, #tpu.memory_space<vmem>>, vector<8x16x16xf32>
      %cst_39 = arith.constant 0.210611388 : f32
      %40 = vector.broadcast %cst_39 : f32 to vector<8x16x16xf32>
      %41 = arith.mulf %40, %39 : vector<8x16x16xf32>
      %42 = arith.addf %38, %41 : vector<8x16x16xf32>
      %c5 = arith.constant 5 : index
      %c0_40 = arith.constant 0 : index
      %c0_41 = arith.constant 0 : index
      %43 = vector.load %arg8[%c5, %c0_40, %c0_41] : memref<14x16x16xf32, #tpu.memory_space<vmem>>, vector<8x16x16xf32>
      %cst_42 = arith.constant 0.11722289 : f32
      %44 = vector.broadcast %cst_42 : f32 to vector<8x16x16xf32>
      %45 = arith.mulf %44, %43 : vector<8x16x16xf32>
      %46 = arith.addf %42, %45 : vector<8x16x16xf32>
      %c6 = arith.constant 6 : index
      %c0_43 = arith.constant 0 : index
      %c0_44 = arith.constant 0 : index
      %47 = vector.load %arg8[%c6, %c0_43, %c0_44] : memref<14x16x16xf32, #tpu.memory_space<vmem>>, vector<8x16x16xf32>
      %cst_45 = arith.constant 0.0441465452 : f32
      %48 = vector.broadcast %cst_45 : f32 to vector<8x16x16xf32>
      %49 = arith.mulf %48, %47 : vector<8x16x16xf32>
      %50 = arith.addf %46, %49 : vector<8x16x16xf32>
      %51 = vector.shape_cast %50 : vector<8x16x16xf32> to vector<128x16xf32>
      %c0_46 = arith.constant 0 : index
      %c0_47 = arith.constant 0 : index
      %52 = vector.load %arg4[%c0_46, %c0_47] : memref<16x16xf32, #tpu.memory_space<vmem>>, vector<16x16xf32>
      %cst_48 = arith.constant dense<0.000000e+00> : vector<128x16xf32>
      %53 = tpu.matmul %51, %52, %cst_48 {dimension_numbers = #tpu.dot_dimension_numbers<[1], [0], [0], [1], [0, 0, 1, 1], [], []>, precision = #tpu.contract_precision<fp32>} : vector<128x16xf32>, vector<16x16xf32>, vector<128x16xf32> -> vector<128x16xf32>
      %54 = vector.shape_cast %53 : vector<128x16xf32> to vector<8x16x16xf32>
      %c0_49 = arith.constant 0 : index
      %c0_50 = arith.constant 0 : index
      %55 = vector.load %arg3[%c0_49, %c0_50] : memref<16x16xf32, #tpu.memory_space<vmem>>, vector<16x16xf32>
      %56 = vector.extract_strided_slice %54 {offsets = [0, 0, 0], sizes = [1, 16, 16], strides = [1, 1, 1]} : vector<8x16x16xf32> to vector<1x16x16xf32>
      %57 = vector.shape_cast %56 : vector<1x16x16xf32> to vector<16x16xf32>
      %cst_51 = arith.constant dense<0.000000e+00> : vector<16x16xf32>
      %58 = tpu.matmul %55, %57, %cst_51 {dimension_numbers = #tpu.dot_dimension_numbers<[1], [0], [0], [1], [0, 0, 1, 1], [], []>, precision = #tpu.contract_precision<fp32>} : vector<16x16xf32>, vector<16x16xf32>, vector<16x16xf32> -> vector<16x16xf32>
      %c0_52 = arith.constant 0 : index
      %c0_53 = arith.constant 0 : index
      %c0_54 = arith.constant 0 : index
      %c0_55 = arith.constant 0 : index
      %59 = vector.load %arg5[%c0_52, %c0_53, %c0_54, %c0_55] : memref<1x8x16x16xf32, #tpu.memory_space<vmem>>, vector<1x1x16x16xf32>
      %60 = vector.shape_cast %59 : vector<1x1x16x16xf32> to vector<16x16xf32>
      %61 = vector.shape_cast %58 : vector<16x16xf32> to vector<1x1x16x16xf32>
      tpu.vector_store %arg5[%c0_52, %c0_53, %c0_54, %c0_55], %61 {strides = array<i32>} : memref<1x8x16x16xf32, #tpu.memory_space<vmem>>, vector<1x1x16x16xf32>,
      %c0_56 = arith.constant 0 : index
      %c0_57 = arith.constant 0 : index
      %62 = vector.load %arg3[%c0_56, %c0_57] : memref<16x16xf32, #tpu.memory_space<vmem>>, vector<16x16xf32>
      %63 = vector.extract_strided_slice %54 {offsets = [1, 0, 0], sizes = [1, 16, 16], strides = [1, 1, 1]} : vector<8x16x16xf32> to vector<1x16x16xf32>
      %64 = vector.shape_cast %63 : vector<1x16x16xf32> to vector<16x16xf32>
      %cst_58 = arith.constant dense<0.000000e+00> : vector<16x16xf32>
      %65 = tpu.matmul %62, %64, %cst_58 {dimension_numbers = #tpu.dot_dimension_numbers<[1], [0], [0], [1], [0, 0, 1, 1], [], []>, precision = #tpu.contract_precision<fp32>} : vector<16x16xf32>, vector<16x16xf32>, vector<16x16xf32> -> vector<16x16xf32>
      %c0_59 = arith.constant 0 : index
      %c1_60 = arith.constant 1 : index
      %c0_61 = arith.constant 0 : index
      %c0_62 = arith.constant 0 : index
      %66 = vector.load %arg5[%c0_59, %c1_60, %c0_61, %c0_62] : memref<1x8x16x16xf32, #tpu.memory_space<vmem>>, vector<1x1x16x16xf32>
      %67 = vector.shape_cast %66 : vector<1x1x16x16xf32> to vector<16x16xf32>
      %68 = vector.shape_cast %65 : vector<16x16xf32> to vector<1x1x16x16xf32>
      tpu.vector_store %arg5[%c0_59, %c1_60, %c0_61, %c0_62], %68 {strides = array<i32>} : memref<1x8x16x16xf32, #tpu.memory_space<vmem>>, vector<1x1x16x16xf32>,
      %c0_63 = arith.constant 0 : index
      %c0_64 = arith.constant 0 : index
      %69 = vector.load %arg3[%c0_63, %c0_64] : memref<16x16xf32, #tpu.memory_space<vmem>>, vector<16x16xf32>
      %70 = vector.extract_strided_slice %54 {offsets = [2, 0, 0], sizes = [1, 16, 16], strides = [1, 1, 1]} : vector<8x16x16xf32> to vector<1x16x16xf32>
      %71 = vector.shape_cast %70 : vector<1x16x16xf32> to vector<16x16xf32>
      %cst_65 = arith.constant dense<0.000000e+00> : vector<16x16xf32>
      %72 = tpu.matmul %69, %71, %cst_65 {dimension_numbers = #tpu.dot_dimension_numbers<[1], [0], [0], [1], [0, 0, 1, 1], [], []>, precision = #tpu.contract_precision<fp32>} : vector<16x16xf32>, vector<16x16xf32>, vector<16x16xf32> -> vector<16x16xf32>
      %c0_66 = arith.constant 0 : index
      %c2_67 = arith.constant 2 : index
      %c0_68 = arith.constant 0 : index
      %c0_69 = arith.constant 0 : index
      %73 = vector.load %arg5[%c0_66, %c2_67, %c0_68, %c0_69] : memref<1x8x16x16xf32, #tpu.memory_space<vmem>>, vector<1x1x16x16xf32>
      %74 = vector.shape_cast %73 : vector<1x1x16x16xf32> to vector<16x16xf32>
      %75 = vector.shape_cast %72 : vector<16x16xf32> to vector<1x1x16x16xf32>
      tpu.vector_store %arg5[%c0_66, %c2_67, %c0_68, %c0_69], %75 {strides = array<i32>} : memref<1x8x16x16xf32, #tpu.memory_space<vmem>>, vector<1x1x16x16xf32>,
      %c0_70 = arith.constant 0 : index
      %c0_71 = arith.constant 0 : index
      %76 = vector.load %arg3[%c0_70, %c0_71] : memref<16x16xf32, #tpu.memory_space<vmem>>, vector<16x16xf32>
      %77 = vector.extract_strided_slice %54 {offsets = [3, 0, 0], sizes = [1, 16, 16], strides = [1, 1, 1]} : vector<8x16x16xf32> to vector<1x16x16xf32>
      %78 = vector.shape_cast %77 : vector<1x16x16xf32> to vector<16x16xf32>
      %cst_72 = arith.constant dense<0.000000e+00> : vector<16x16xf32>
      %79 = tpu.matmul %76, %78, %cst_72 {dimension_numbers = #tpu.dot_dimension_numbers<[1], [0], [0], [1], [0, 0, 1, 1], [], []>, precision = #tpu.contract_precision<fp32>} : vector<16x16xf32>, vector<16x16xf32>, vector<16x16xf32> -> vector<16x16xf32>
      %c0_73 = arith.constant 0 : index
      %c3_74 = arith.constant 3 : index
      %c0_75 = arith.constant 0 : index
      %c0_76 = arith.constant 0 : index
      %80 = vector.load %arg5[%c0_73, %c3_74, %c0_75, %c0_76] : memref<1x8x16x16xf32, #tpu.memory_space<vmem>>, vector<1x1x16x16xf32>
      %81 = vector.shape_cast %80 : vector<1x1x16x16xf32> to vector<16x16xf32>
      %82 = vector.shape_cast %79 : vector<16x16xf32> to vector<1x1x16x16xf32>
      tpu.vector_store %arg5[%c0_73, %c3_74, %c0_75, %c0_76], %82 {strides = array<i32>} : memref<1x8x16x16xf32, #tpu.memory_space<vmem>>, vector<1x1x16x16xf32>,
      %c0_77 = arith.constant 0 : index
      %c0_78 = arith.constant 0 : index
      %83 = vector.load %arg3[%c0_77, %c0_78] : memref<16x16xf32, #tpu.memory_space<vmem>>, vector<16x16xf32>
      %84 = vector.extract_strided_slice %54 {offsets = [4, 0, 0], sizes = [1, 16, 16], strides = [1, 1, 1]} : vector<8x16x16xf32> to vector<1x16x16xf32>
      %85 = vector.shape_cast %84 : vector<1x16x16xf32> to vector<16x16xf32>
      %cst_79 = arith.constant dense<0.000000e+00> : vector<16x16xf32>
      %86 = tpu.matmul %83, %85, %cst_79 {dimension_numbers = #tpu.dot_dimension_numbers<[1], [0], [0], [1], [0, 0, 1, 1], [], []>, precision = #tpu.contract_precision<fp32>} : vector<16x16xf32>, vector<16x16xf32>, vector<16x16xf32> -> vector<16x16xf32>
      %c0_80 = arith.constant 0 : index
      %c4_81 = arith.constant 4 : index
      %c0_82 = arith.constant 0 : index
      %c0_83 = arith.constant 0 : index
      %87 = vector.load %arg5[%c0_80, %c4_81, %c0_82, %c0_83] : memref<1x8x16x16xf32, #tpu.memory_space<vmem>>, vector<1x1x16x16xf32>
      %88 = vector.shape_cast %87 : vector<1x1x16x16xf32> to vector<16x16xf32>
      %89 = vector.shape_cast %86 : vector<16x16xf32> to vector<1x1x16x16xf32>
      tpu.vector_store %arg5[%c0_80, %c4_81, %c0_82, %c0_83], %89 {strides = array<i32>} : memref<1x8x16x16xf32, #tpu.memory_space<vmem>>, vector<1x1x16x16xf32>,
      %c0_84 = arith.constant 0 : index
      %c0_85 = arith.constant 0 : index
      %90 = vector.load %arg3[%c0_84, %c0_85] : memref<16x16xf32, #tpu.memory_space<vmem>>, vector<16x16xf32>
      %91 = vector.extract_strided_slice %54 {offsets = [5, 0, 0], sizes = [1, 16, 16], strides = [1, 1, 1]} : vector<8x16x16xf32> to vector<1x16x16xf32>
      %92 = vector.shape_cast %91 : vector<1x16x16xf32> to vector<16x16xf32>
      %cst_86 = arith.constant dense<0.000000e+00> : vector<16x16xf32>
      %93 = tpu.matmul %90, %92, %cst_86 {dimension_numbers = #tpu.dot_dimension_numbers<[1], [0], [0], [1], [0, 0, 1, 1], [], []>, precision = #tpu.contract_precision<fp32>} : vector<16x16xf32>, vector<16x16xf32>, vector<16x16xf32> -> vector<16x16xf32>
      %c0_87 = arith.constant 0 : index
      %c5_88 = arith.constant 5 : index
      %c0_89 = arith.constant 0 : index
      %c0_90 = arith.constant 0 : index
      %94 = vector.load %arg5[%c0_87, %c5_88, %c0_89, %c0_90] : memref<1x8x16x16xf32, #tpu.memory_space<vmem>>, vector<1x1x16x16xf32>
      %95 = vector.shape_cast %94 : vector<1x1x16x16xf32> to vector<16x16xf32>
      %96 = vector.shape_cast %93 : vector<16x16xf32> to vector<1x1x16x16xf32>
      tpu.vector_store %arg5[%c0_87, %c5_88, %c0_89, %c0_90], %96 {strides = array<i32>} : memref<1x8x16x16xf32, #tpu.memory_space<vmem>>, vector<1x1x16x16xf32>,
      %c0_91 = arith.constant 0 : index
      %c0_92 = arith.constant 0 : index
      %97 = vector.load %arg3[%c0_91, %c0_92] : memref<16x16xf32, #tpu.memory_space<vmem>>, vector<16x16xf32>
      %98 = vector.extract_strided_slice %54 {offsets = [6, 0, 0], sizes = [1, 16, 16], strides = [1, 1, 1]} : vector<8x16x16xf32> to vector<1x16x16xf32>
      %99 = vector.shape_cast %98 : vector<1x16x16xf32> to vector<16x16xf32>
      %cst_93 = arith.constant dense<0.000000e+00> : vector<16x16xf32>
      %100 = tpu.matmul %97, %99, %cst_93 {dimension_numbers = #tpu.dot_dimension_numbers<[1], [0], [0], [1], [0, 0, 1, 1], [], []>, precision = #tpu.contract_precision<fp32>} : vector<16x16xf32>, vector<16x16xf32>, vector<16x16xf32> -> vector<16x16xf32>
      %c0_94 = arith.constant 0 : index
      %c6_95 = arith.constant 6 : index
      %c0_96 = arith.constant 0 : index
      %c0_97 = arith.constant 0 : index
      %101 = vector.load %arg5[%c0_94, %c6_95, %c0_96, %c0_97] : memref<1x8x16x16xf32, #tpu.memory_space<vmem>>, vector<1x1x16x16xf32>
      %102 = vector.shape_cast %101 : vector<1x1x16x16xf32> to vector<16x16xf32>
      %103 = vector.shape_cast %100 : vector<16x16xf32> to vector<1x1x16x16xf32>
      tpu.vector_store %arg5[%c0_94, %c6_95, %c0_96, %c0_97], %103 {strides = array<i32>} : memref<1x8x16x16xf32, #tpu.memory_space<vmem>>, vector<1x1x16x16xf32>,
      %c0_98 = arith.constant 0 : index
      %c0_99 = arith.constant 0 : index
      %104 = vector.load %arg3[%c0_98, %c0_99] : memref<16x16xf32, #tpu.memory_space<vmem>>, vector<16x16xf32>
      %105 = vector.extract_strided_slice %54 {offsets = [7, 0, 0], sizes = [1, 16, 16], strides = [1, 1, 1]} : vector<8x16x16xf32> to vector<1x16x16xf32>
      %106 = vector.shape_cast %105 : vector<1x16x16xf32> to vector<16x16xf32>
      %cst_100 = arith.constant dense<0.000000e+00> : vector<16x16xf32>
      %107 = tpu.matmul %104, %106, %cst_100 {dimension_numbers = #tpu.dot_dimension_numbers<[1], [0], [0], [1], [0, 0, 1, 1], [], []>, precision = #tpu.contract_precision<fp32>} : vector<16x16xf32>, vector<16x16xf32>, vector<16x16xf32> -> vector<16x16xf32>
      %c0_101 = arith.constant 0 : index
      %c7 = arith.constant 7 : index
      %c0_102 = arith.constant 0 : index
      %c0_103 = arith.constant 0 : index
      %108 = vector.load %arg5[%c0_101, %c7, %c0_102, %c0_103] : memref<1x8x16x16xf32, #tpu.memory_space<vmem>>, vector<1x1x16x16xf32>
      %109 = vector.shape_cast %108 : vector<1x1x16x16xf32> to vector<16x16xf32>
      %110 = vector.shape_cast %107 : vector<16x16xf32> to vector<1x1x16x16xf32>
      tpu.vector_store %arg5[%c0_101, %c7, %c0_102, %c0_103], %110 {strides = array<i32>} : memref<1x8x16x16xf32, #tpu.memory_space<vmem>>, vector<1x1x16x16xf32>,
      %c5_104 = arith.constant 5 : index
      %c0_105 = arith.constant 0 : index
      %c0_106 = arith.constant 0 : index
      %111 = vector.load %arg6[%c5_104, %c0_105, %c0_106] : memref<8x16x16xf32, #tpu.memory_space<vmem>>, vector<3x16x16xf32>
      %c0_107 = arith.constant 0 : index
      %c0_108 = arith.constant 0 : index
      %c0_109 = arith.constant 0 : index
      %112 = vector.load %arg7[%c0_107, %c0_108, %c0_109] : memref<3x16x16xf32, #tpu.memory_space<vmem>>, vector<3x16x16xf32>
      tpu.vector_store %arg7[%c0_107, %c0_108, %c0_109], %111 {strides = array<i32>} : memref<3x16x16xf32, #tpu.memory_space<vmem>>, vector<3x16x16xf32>,
    } else {
    }
    %c0_7 = arith.constant 0 : index
    %c0_8 = arith.constant 0 : index
    %c0_9 = arith.constant 0 : index
    %12 = vector.load %arg6[%c0_7, %c0_8, %c0_9] : memref<8x16x16xf32, #tpu.memory_space<vmem>>, vector<8x16x16xf32>
    tpu.vector_store %arg6[%c0_7, %c0_8, %c0_9], %5 {strides = array<i32>} : memref<8x16x16xf32, #tpu.memory_space<vmem>>, vector<8x16x16xf32>,
    return
  }
  func.func @transform_0(%arg0: i32, %arg1: i32) -> (i32, i32, i32, i32) {
    %c1_i32 = arith.constant 1 : i32
    %0 = arith.minsi %arg1, %c1_i32 : i32
    %c0_i32 = arith.constant 0 : i32
    %c0_i32_0 = arith.constant 0 : i32
    %c0_i32_1 = arith.constant 0 : i32
    return %arg0, %0, %c0_i32, %c0_i32_0 : i32, i32, i32, i32
  }
  func.func @transform_1(%arg0: i32, %arg1: i32) -> (i32, i32) {
    %c0_i32 = arith.constant 0 : i32
    %c0_i32_0 = arith.constant 0 : i32
    %c0_i32_1 = arith.constant 0 : i32
    return %c0_i32, %c0_i32_0 : i32, i32
  }
  func.func @transform_2(%arg0: i32, %arg1: i32) -> (i32, i32) {
    %c0_i32 = arith.constant 0 : i32
    %c0_i32_0 = arith.constant 0 : i32
    %c0_i32_1 = arith.constant 0 : i32
    return %c0_i32, %c0_i32_0 : i32, i32
  }
  func.func @transform_3(%arg0: i32, %arg1: i32) -> (i32, i32, i32, i32) {
    %c1_i32 = arith.constant 1 : i32
    %0 = arith.subi %arg1, %c1_i32 : i32
    %c0_i32 = arith.constant 0 : i32
    %1 = arith.maxsi %0, %c0_i32 : i32
    %c0_i32_0 = arith.constant 0 : i32
    %c0_i32_1 = arith.constant 0 : i32
    %c0_i32_2 = arith.constant 0 : i32
    return %arg0, %1, %c0_i32_0, %c0_i32_1 : i32, i32, i32, i32
  }
}

</mosaic_0001>

<bundles_post_ra>
// kernel: tpu_custom_call.1
= control target key start
LH: loop header
LB: loop body
LE: loop exit
PB: predicated region body
PF: predicated region fallthrough
CT: control target
= control target key end

     0   :  { %s8951_s0 = inlined_call_operand.hbm [shape: f32[2,16,16,16], index: 0, kind: input, shape index: {}]   ;;  %s8952_s1 = inlined_call_operand.hbm [shape: f32[16,16], index: 1, kind: input, shape index: {}]   ;;  %s8953_s2 = inlined_call_operand.hbm [shape: f32[16,16], index: 2, kind: input, shape index: {}]   ;;  %s8954_s3 = inlined_call_operand.hbm [shape: f32[2,16,16,16], index: 3, kind: output, shape index: {}]  }
   0x1   :  { %8984 = sst [smem:[#allocation37_spill]] %s8952_s1 }
   0x2   :  { %8985 = sst [smem:[#allocation38_spill]] %s8953_s2 }
   0x3   :  { %8986 = sst [smem:[#allocation39_spill]] %s8954_s3 }
   0x4   :  { %8 = vsyncpa [#allocation6], 0 }
   0x5   :  { %10 = vsyncpa [#allocation6 + $0x1], 0 }
   0x6   :  { %11 = vsyncpa [#allocation9], 0 }
   0x7   :  { %12 = vsyncpa [#allocation7], 0 }
   0x8   :  { %14 = vsyncpa [#allocation7 + $0x1], 0  ;;  %s7718_s12 = smov 0   ;;  %s7720_s13 = smov 0  }
   0x9   :  { %s7722_s14 = smov 0   ;;  %s7724_s15 = smov 0  }
   0xa   :  { %s7726_s16 = smov 0   ;;  %s7728_s17 = smov 0  }
   0xb   :  { %s7730_s18 = smov 0   ;;  %s7732_s19 = smov 0  }
   0xc   :  { %s7734_s20 = smov 0   ;;  %s7736_s21 = smov 0  }
   0xd   :  { %s7738_s22 = smov 0  }
   0xe LB: > { %8987 = sst [smem:[#allocation15_spill]] %s7647_s12  ;;  %s6123_s23 = sadd.s32 4294967295, %s7687_s22   ;;  %s7687_s22 = sphi %s7738_s22, %s20_s22   ;;  %s7683_s21 = sphi %s7736_s21, %s9068_s21   ;;  %s7679_s20 = sphi %s7734_s20, %s9058_s20   ;;  %s7675_s19 = sphi %s7732_s19, %s9067_s19   ;;  %s7671_s18 = sphi %s7730_s18, %s9066_s18   ;;  %s7667_s17 = sphi %s7728_s17, %s9065_s17   ;;  %s7663_s16 = sphi %s7726_s16, %s9064_s16   ;;  %s7659_s15 = sphi %s7724_s15, %s9063_s15   ;;  %s7655_s14 = sphi %s7722_s14, %s9062_s14   ;;  %s7651_s13 = sphi %s7720_s13, %s9061_s13   ;;  %s7647_s12 = sphi %s7718_s12, %s9060_s12  }
   0xf   : > { %8988 = sst [smem:[#allocation16_spill]] %s7675_s19  ;;  %s6124_s24 = sadd.s32 4294967294, %s7687_s22  }
  0x10   : > { %8989 = sst [smem:[#allocation17_spill]] %s7679_s20  ;;  %p58_p0 = scmp.ne.s32.totalorder %s7663_s16, %s7659_s15 }
  0x11   : > { %p7774_p1 = scmp.eq.s32.totalorder %s6123_s23, 0  ;;  %p131_p2 = scmp.ne.s32.totalorder %s7655_s14, %s7651_s13 }
  0x12   : > { %p132_p4 = scmp.eq.s32.totalorder %s6123_s23, 5  ;;  %p137_p5 = scmp.ne.s32.totalorder %s7651_s13, %s7647_s12 }
  0x13   : > { %s8990_s25 = scalar_select %p7774_p1, 1, 0 }
  0x14   : > { %p7783_p3 = por %p7774_p1, %p58_p0  ;;  %p138_p6 = scmp.eq.s32.totalorder %s6124_s24, 5 }
  0x15   : > { %p7789_p7 = por %p132_p4, %p131_p2  ;;  %p6127_p8 = scmp.ge.s32.totalorder %s7687_s22, 1 }
  0x16   : > { %s8991_s27 = scalar_select %p7783_p3, 1, 0 }
  0x17   : > { %s8992_s28 = scalar_select %p7789_p7, 1, 0 }
  0x18   : > { %p7794_p9 = por %p138_p6, %p137_p5  ;;  %p145_p10 = scmp.lt.s32.totalorder %s7687_s22, 7 }
  0x19   : > { %8993 = sst [smem:[#allocation18_spill]] %s8992_s28  ;;  %s7689_s4 = smov [#allocation8]  }
  0x1a   : > { %s8994_s29 = scalar_select %p7794_p9, 1, 0 }
  0x1b   : > { %p7799_p11 = pnand %p6127_p8, %p145_p10  ;;  %s157_s5 = sshll.u32 %s7689_s4, 4  ;;  %s158_s5 = int_to_ptr.vmem [resolvable:$true] %s157_s5 }
  0x1c   : > { %8995 = sst [smem:[#allocation19_spill]] %s8994_s29  ;;  %s7690_s7 = smov [#allocation10]  }
  0x1d   : > { %s8996_s30 = scalar_select %p7799_p11, 1, 0 }
  0x1e   : > { %p7359_p12 = pneg %p7799_p11  ;;  %s170_s8 = sshll.u32 %s7690_s7, 4  ;;  %s7811_s8 = int_to_ptr.vmem [resolvable:$true] %s170_s8 }
  0x1f   : > { %s8998_s1 = sld [smem:[#allocation37_spill]] }
  0x20   : > { %p7807_p13 = pnand %p7359_p12, %p7774_p1 }
  0x22   : > { %p7477_p2 = pneg %p7807_p13 }
  0x25   : > { %s7475_s11 = scalar_lea.hbm %s8998_s1, 256 }
  0x26   : > { %p7476_p0 = scmp.ne.s32.totalorder %s8998_s1, %s7475_s11  ;;  %p7482_p6 = scmp.lt.u32.totalorder %s7475_s11, %s8998_s1 }
  0x28   : > { %p7478_p4 = pnand %p7477_p2, %p7476_p0 }
  0x2a   : > { %p7479_p5 = pneg %p7478_p4 }
  0x2c   : > { %p7484_p8 = pnand %p7482_p6, %p7479_p5 }
  0x2e   : > { %7487 = shalt.err (!%p7484_p8)
}
  0x2f   : > { %s7488_s7 = scalar_lea.vmem %s158_s5, 256  ;;  %p7496_p7 = scmp.lt.s32.totalorder %s158_s5, %s158_s5 }
  0x30   : > { %p7489_p10 = scmp.ne.s32.totalorder %s158_s5, %s7488_s7  ;;  %p7497_p1 = scmp.lt.s32.totalorder %s7488_s7, %s7488_s7 }
  0x32   : > { %p7491_p12 = pnand %p7489_p10, %p7477_p2  ;;  %p7498_p3 = por %p7497_p1, %p7496_p7 }
  0x34   : > { %p7492_p9 = pneg %p7491_p12 }
  0x36   : > { %p7499_p11 = pnand %p7498_p3, %p7492_p9 }
  0x38   : > { %7502 = shalt.err (!%p7499_p11)
}
  0x39   : > { %s8962_s9 = smov 128   ;;  %s8963_s10 = smov 8  }
  0x3a   : > { %7362 = dma.hbm_to_vmem [thread:$0]  (!%p7807_p13), %s8998_s1, 256, %s158_s5, [#allocation9], %s8962_s9, %s8962_s9, %s8963_s10  }
  0x3b   : > { %s8999_s2 = sld [smem:[#allocation38_spill]] }
  0x41   : > { %s7503_s4 = scalar_lea.hbm %s8999_s2, 256 }
  0x42   : > { %p7504_p1 = scmp.ne.s32.totalorder %s8999_s2, %s7503_s4  ;;  %p7510_p9 = scmp.lt.u32.totalorder %s7503_s4, %s8999_s2 }
  0x44   : > { %p7506_p3 = pnand %p7504_p1, %p7477_p2 }
  0x46   : > { %p7507_p7 = pneg %p7506_p3 }
  0x48   : > { %p7512_p11 = pnand %p7510_p9, %p7507_p7 }
  0x4a   : > { %7515 = shalt.err (!%p7512_p11)
}
  0x4b   : > { %s7516_s5 = scalar_lea.vmem %s7811_s8, 256  ;;  %p7524_p6 = scmp.lt.s32.totalorder %s7811_s8, %s7811_s8 }
  0x4c   : > { %p7517_p0 = scmp.ne.s32.totalorder %s7811_s8, %s7516_s5  ;;  %p7525_p8 = scmp.lt.s32.totalorder %s7516_s5, %s7516_s5 }
  0x4e   : > { %p7519_p4 = pnand %p7517_p0, %p7477_p2  ;;  %p7526_p10 = por %p7525_p8, %p7524_p6 }
  0x50   : > { %p7520_p5 = pneg %p7519_p4 }
  0x52   : > { %p7527_p12 = pnand %p7526_p10, %p7520_p5 }
  0x54   : > { %7530 = shalt.err (!%p7527_p12)
}
  0x55   : > { %7365 = dma.hbm_to_vmem [thread:$0]  (!%p7807_p13), %s8999_s2, 256, %s7811_s8, [#allocation9], %s8962_s9, %s8962_s9, %s8963_s10  }
  0x56   : > { %s29_s29 = sadd.s32 1, %s7679_s20  ;;  %s32_s6 = sadd.s32 1, %s7683_s21 }
  0x57   : > { %p30_p2 = scmp.ge.s32.totalorder %s29_s29, 3  ;;  %p36_p1 = scmp.lt.s32.totalorder %s7679_s20, 1 }
  0x58   : > { %s45_s11 = sadd.s32 1, %s7667_s17  ;;  %p52_p3 = scmp.ne.s32.totalorder %s7667_s17, %s7663_s16 }
  0x59   : > { %s9070_s29 = smov (%p30_p2, %s29_s29), 0  ;;  %s9072_s6 = smov (!%p30_p2, %s32_s6), %s7683_s21 }
  0x5a   : > { %9000 = sst [smem:[#allocation20_spill]] %s9070_s29  ;;  %p34_p7 = scmp.ge.s32.totalorder %s9072_s6, 2 }
  0x5b   : > { %s37_s15 = scalar_select %p36_p1, %s7679_s20, 1 }
  0x5c   : > { %p38_p9 = scmp.lt.s32.totalorder %s9070_s29, 1  ;;  %p53_p11 = scmp.eq.s32.totalorder %s7687_s22, 0 }
  0x5d   : > { %s6125_s8 = sadd.s32 4294967295, %s7679_s20  ;;  %s9074_s6 = smov (%p34_p7, %s9072_s6), 0 }
  0x5e   : > { %9001 = sst [smem:[#allocation21_spill]] %s9074_s6  ;;  %s40_s24 = ssub.s32 %s7683_s21, %s9074_s6 }
  0x5f   : > { %s39_s23 = scalar_select %p38_p9, %s9070_s29, 1 }
  0x60   : > { %p7884_p13 = por %p53_p11, %p52_p3  ;;  %p111_p0 = scmp.gt.s32.totalorder %s6125_s8, 0 }
  0x61   : > { %s41_s7 = ssub.s32 %s37_s15, %s39_s23  ;;  %s6126_s12 = sadd.s32 4294967295, %s9070_s29 }
  0x62   : > { %s42_s5 = sor.u32 %s41_s7, %s40_s24  ;;  %p114_p5 = scmp.gt.s32.totalorder %s6126_s12, 0 }
  0x63   : > { %p43_p4 = scmp.eq.s32.totalorder %s42_s5, 0  ;;  %s9076_s8 = smov (!%p111_p0, %s6125_s8), 0 }
  0x64   : > { %s9078_s12 = smov (!%p114_p5, %s6126_s12), 0  ;;  %p7376_p6 = scmp.lt.s32.totalorder %s7687_s22, 6 }
  0x65   : > { %s7890_s26 = scalar_select %p43_p4, %s7667_s17, %s45_s11  }
  0x66   : > { %s184_s9 = sand.u32 1, %s7667_s17   ;;  %s117_s10 = ssub.s32 %s9076_s8, %s9078_s12 }
  0x67   : > { %9003 = sst [smem:[#allocation22_spill]] %s7890_s26  ;;  %s118_s1 = sor.u32 %s117_s10, %s40_s24 }
  0x68   : > { %s6131_s2 = sshll.u32 %s184_s9, 7  ;;  %p119_p8 = scmp.eq.s32.totalorder %s118_s1, 0 }
  0x69   : > { %s6165_s23 = sshll.u32 %s37_s15, 4  ;;  %s6134_s6 = sshll.u32 %s7683_s21, 5 }
  0x6a   : > { %s9004_s20 = sadd.s32 1, %s7655_s14  ;;  %s197_s7 = sadd.s32 %s6165_s23, %s6134_s6 }
  0x6b   : > { %s7898_s3 = scalar_select %p119_p8, %s7655_s14, %s9004_s20  }
  0x6c   : > { %s188_s5 = scalar_lea.vmem [#allocation5], %s6131_s2  ;;  %s6135_s28 = sshll.u32 %s197_s7, 7 }
  0x6d   : > { %s200_s29 = sshll.u32 %s188_s5, 4  ;;  %s7905_s19 = scalar_lea.hbm %s8951_s0, %s6135_s28  ;;  %s7900_s29 = int_to_ptr.vmem [resolvable:$true] %s200_s29 }
  0x6e   : > { %p7911_p10 = pnand %p7376_p6, %p7884_p13  ;;  %s7915_s2 = scalar_lea.sflag [#allocation6], %s184_s9 }
  0x6f   : > { %s7531_s20 = scalar_lea.hbm %s7905_s19, 2048  ;;  %s7536_s6 = scalar_lea.hbm %s8951_s0, 8192 }
  0x70   : > { %p7532_p12 = scmp.ne.s32.totalorder %s7905_s19, %s7531_s20  ;;  %p7533_p2 = pneg %p7911_p10 }
  0x71   : > { %p7537_p7 = scmp.lt.u32.totalorder %s7905_s19, %s8951_s0  ;;  %p7538_p9 = scmp.lt.u32.totalorder %s7536_s6, %s7531_s20 }
  0x72   : > { %p7534_p1 = pnand %p7533_p2, %p7532_p12  ;;  %p7540_p13 = scmp.lt.u32.totalorder %s7531_s20, %s7905_s19 }
  0x73   : > { %p7539_p11 = por %p7538_p9, %p7537_p7 }
  0x74   : > { %p7535_p3 = pneg %p7534_p1 }
  0x75   : > { %p7541_p0 = por %p7540_p13, %p7539_p11 }
  0x77   : > { %p7542_p4 = pnand %p7541_p0, %p7535_p3 }
  0x79   : > { %7545 = shalt.err (!%p7542_p4)
}
  0x7a   : > { %s7546_s9 = scalar_lea.vmem %s7900_s29, 2048  ;;  %s7693_s24 = smov [#allocation5]  }
  0x7b   : > { %p7547_p5 = scmp.ne.s32.totalorder %s7900_s29, %s7546_s9  ;;  %s7551_s4 = sshll.u32 %s7693_s24, 4  ;;  %s7552_s4 = int_to_ptr.vmem [resolvable:$false] %s7551_s4 }
  0x7c   : > { %s7553_s12 = scalar_lea.vmem %s7552_s4, 4096  ;;  %p7554_p12 = scmp.lt.s32.totalorder %s7900_s29, %s7552_s4 }
  0x7d   : > { %p7549_p6 = pnand %p7547_p5, %p7533_p2  ;;  %p7555_p1 = scmp.lt.s32.totalorder %s7553_s12, %s7546_s9 }
  0x7f   : > { %p7550_p8 = pneg %p7549_p6  ;;  %p7556_p7 = por %p7555_p1, %p7554_p12 }
  0x81   : > { %p7557_p9 = pnand %p7556_p7, %p7550_p8 }
  0x83   : > { %7560 = shalt.err (!%p7557_p9)
}
  0x84   : > { %s9006_s26 = smov 8   ;;  %s9007_s23 = smov 128  }
  0x85   : > { %7369 = dma.hbm_to_vmem [thread:$0]  (!%p7911_p10), %s7905_s19, 2048, %s7900_s29, %s7915_s2, %s9007_s23, %s9007_s23, %s9006_s26  }
  0x86   : > { %p9008_p2 = scmp.ne.s32.totalorder %s8996_s30, 0 }
  0x88   : > { %212 = sbr.rel (%p9008_p2) target bundleno = 1214 (0x4be), region = 32 }
  0x8f   : > { %s214_s7 = sand.u32 1, %s7663_s16   ;;  %p9009_p3 = scmp.ne.s32.totalorder %s8991_s27, 0 }
  0x90   : > { %s6137_s5 = sshll.u32 %s214_s7, 7  ;;  %s215_s11 = scalar_lea.sflag [#allocation6], %s214_s7 }
  0x91   : > { %s7949_s20 = scalar_lea.vmem [#allocation5], %s6137_s5 }
  0x92   : > { %7634 = dma.done.wait (%p9009_p3), %s215_s11, 2048  }
  0x93   : > { %7636 = vsyncadd (%p9009_p3), %s215_s11, 4294965248  ;;  %p9010_p11 = scmp.ne.s32.totalorder %s8990_s25, 0 }
  0x95   : > { %7638 = dma.done.wait (%p9010_p11), [#allocation9], 512  }
  0x96   : > { %7640 = vsyncadd (%p9010_p11), [#allocation9], 4294966784  ;;  %s246_s19 = sand.u32 1, %s7651_s13   ;;  %v256_v0 = vld [vmem:[%s7949_s20] sm:$0xff]  ;;  %v257_v1 = vld [vmem:[%s7949_s20 + $0x8] sm:$0xff]  ;;  %p6141_p10 = scmp.ne.s32.totalorder %s7671_s18, 0 }
  0x97   : > { %s7962_s27 = sshll.u32 %s246_s19, 7  ;;  %v258_v2 = vld [vmem:[%s7949_s20 + $0x10] sm:$0xff]  ;;  %v259_v3 = vld [vmem:[%s7949_s20 + $0x18] sm:$0xff]  ;;  %v260_v4 = vld [vmem:[%s7949_s20 + $0x20] sm:$0xff]  ;;  %v272_v6 = vadd.f32 1.0, %v256_v0  ;;  %v273_v7 = vadd.f32 1.0, %v257_v1 }
  0x98   : > { %v261_v5 = vld [vmem:[%s7949_s20 + $0x28] sm:$0xff]  ;;  %v274_v8 = vadd.f32 1.0, %v258_v2  ;;  %v262_v9 = vld [vmem:[%s7949_s20 + $0x30] sm:$0xff]  ;;  %v263_v10 = vld [vmem:[%s7949_s20 + $0x38] sm:$0xff]  ;;  %v275_v12 = vadd.f32 1.0, %v259_v3  ;;  %v276_v13 = vadd.f32 1.0, %v260_v4 }
  0x99   : > { %v264_v11 = vld [vmem:[%s7949_s20 + $0x40] sm:$0xff]  ;;  %v277_v14 = vadd.f32 1.0, %v261_v5  ;;  %v265_v15 = vld [vmem:[%s7949_s20 + $0x48] sm:$0xff]  ;;  %v266_v16 = vld [vmem:[%s7949_s20 + $0x50] sm:$0xff]  ;;  %v278_v18 = vadd.f32 1.0, %v262_v9  ;;  %v279_v19 = vadd.f32 1.0, %v263_v10 }
  0x9a   : > { %v267_v17 = vld [vmem:[%s7949_s20 + $0x58] sm:$0xff]  ;;  %v280_v20 = vadd.f32 1.0, %v264_v11  ;;  %v268_v21 = vld [vmem:[%s7949_s20 + $0x60] sm:$0xff]  ;;  %v269_v22 = vld [vmem:[%s7949_s20 + $0x68] sm:$0xff]  ;;  %v281_v24 = vadd.f32 1.0, %v265_v15  ;;  %v282_v25 = vadd.f32 1.0, %v266_v16 }
  0x9b   : > { %v270_v23 = vld [vmem:[%s7949_s20 + $0x70] sm:$0xff]  ;;  %v283_v26 = vadd.f32 1.0, %v267_v17  ;;  %v271_v27 = vld [vmem:[%s7949_s20 + $0x78] sm:$0xff]  ;;  %v284_v28 = vadd.f32 1.0, %v268_v21  ;;  %v285_v29 = vadd.f32 1.0, %v269_v22  ;;  %v7980_v31 = vmul.f32 0.5, %v272_v6 }
  0x9c   : > { %v286_v30 = vadd.f32 1.0, %v270_v23  ;;  %v287_v32 = vadd.f32 1.0, %v271_v27  ;;  %v7982_v33 = vmul.f32 0.5, %v273_v7  ;;  %v7984_v34 = vmul.f32 0.5, %v274_v8  ;;  %s8013_s25 = scalar_lea.vmem [#allocation11], %s7962_s27 }
  0x9d   : > { %v7986_v35 = vmul.f32 0.5, %v275_v12  ;;  %v7988_v36 = vmul.f32 0.5, %v276_v13  ;;  %v7990_v37 = vmul.f32 0.5, %v277_v14  ;;  %v7992_v38 = vmul.f32 0.5, %v278_v18 }
  0x9e   : > { %9011 = vst [vmem:[#allocation23_spill] sm:$0xff] %v7984_v34  ;;  %v7994_v39 = vmul.f32 0.5, %v279_v19  ;;  %v7996_v40 = vmul.f32 0.5, %v280_v20  ;;  %v7998_v41 = vmul.f32 0.5, %v281_v24  ;;  %v8000_v42 = vmul.f32 0.5, %v282_v25 }
  0x9f   : > { %9012 = vst [vmem:[#allocation24_spill] sm:$0xff] %v7986_v35  ;;  %9013 = vst [vmem:[#allocation25_spill] sm:$0xff] %v7988_v36  ;;  %v8002_v43 = vmul.f32 0.5, %v283_v26  ;;  %v8004_v44 = vmul.f32 0.5, %v284_v28  ;;  %v8006_v45 = vmul.f32 0.5, %v285_v29  ;;  %v8008_v46 = vmul.f32 0.5, %v286_v30 }
  0xa0   : > { %9014 = vst [vmem:[#allocation26_spill] sm:$0xff] %v7990_v37  ;;  %9015 = vst [vmem:[#allocation27_spill] sm:$0xff] %v7992_v38  ;;  %v8010_v47 = vmul.f32 0.5, %v287_v32  ;;  %307 = sbr.rel (%p6141_p10) target bundleno = 169 (0xa9), region = 48  ;;  %vm308_vm0 = vcmask (!%p6141_p10), 130048   ;;  %v7694_v48 = vmov (!%p6141_p10), 0.0  }
  0xa1   : > { %9016 = vst [vmem:[#allocation28_spill] sm:$0xff] %v7994_v39  ;;  %9017 = vst [vmem:[#allocation29_spill] sm:$0xff] %v7996_v40 }
  0xa2   : > { %9018 = vst [vmem:[#allocation30_spill] sm:$0xff] %v7998_v41  ;;  %9019 = vst [vmem:[#allocation31_spill] sm:$0xff] %v8000_v42 }
  0xa3   : > { %9020 = vst [vmem:[#allocation32_spill] sm:$0xff] %v8002_v43  ;;  %9021 = vst [vmem:[#allocation33_spill] sm:$0xff] %v8004_v44 }
  0xa4   : > { %9022 = vst [vmem:[#allocation34_spill] sm:$0xff] %v8006_v45  ;;  %9023 = vst [vmem:[#allocation35_spill] sm:$0xff] %v8008_v46 }
  0xa5   : > { %9024 = vst [vmem:[#allocation36_spill] sm:$0xff] %v8010_v47  ;;  %309 = vst.msk [vmem:[#allocation3] sm:$0xff] (!%p6141_p10), %vm308_vm0, %v7694_v48 }
  0xa6   : > { %310 = vst.msk [vmem:[#allocation3 + $0x8] sm:$0xff] (!%p6141_p10), %vm308_vm0, %v7694_v48  ;;  %311 = vst.msk [vmem:[#allocation3 + $0x10] sm:$0xff] (!%p6141_p10), %vm308_vm0, %v7694_v48 }
  0xa7   : > { %312 = vst.msk [vmem:[#allocation3 + $0x18] sm:$0xff] %vm308_vm0, %v7694_v48  ;;  %313 = vst.msk [vmem:[#allocation3 + $0x20] sm:$0xff] %vm308_vm0, %v7694_v48 }
  0xa8   : > { %314 = vst.msk [vmem:[#allocation3 + $0x28] sm:$0xff] %vm308_vm0, %v7694_v48 }
  0xa9 PF: > { %p6142_p13 = scmp.le.s32.totalorder %s7671_s18, 0 }
  0xaa   : > { %v707_v49 = vld [vmem:[#allocation10] sm:$0xff] (!%p6142_p13)  ;;  %v708_v50 = vld [vmem:[#allocation10 + $0x8] sm:$0xff] (!%p6142_p13)  ;;  %vm328_vm1 = vcmask (!%p6142_p13), 130048   ;;  %p319_p0 = scmp.lt.s32.totalorder (!%p6142_p13), %s7671_s18, 2  ;;  %v337_v57 = vld [vmem:[#allocation2 + $0x10] sm:$0xff] (!%p6142_p13) }
  0xab   : > { %318 = sbr.rel (%p6142_p13) target bundleno = 1184 (0x4a0), region = 52  ;;  %v758_v52 = vand.u32 (!%p6142_p13), 4294901760, %v707_v49  ;;  %v761_v53 = vand.u32 (!%p6142_p13), 4294901760, %v708_v50  ;;  %v335_v56 = vld [vmem:[#allocation2] sm:$0xff] (!%p6142_p13)  ;;  %v341_v59 = vld [vmem:[#allocation2 + $0x30] sm:$0xff] (!%p6142_p13)  ;;  %354 = vst.msk [vmem:[#allocation4 + $0x40] sm:$0xff] (!%p6142_p13), %vm328_vm1, %v337_v57 }
  0xac   : > { %v339_v58 = vld [vmem:[#allocation2 + $0x20] sm:$0xff] (!%p6142_p13)  ;;  %352 = vst.msk [vmem:[#allocation4 + $0x30] sm:$0xff] (!%p6142_p13), %vm328_vm1, %v335_v56  ;;  %358 = vst.msk [vmem:[#allocation4 + $0x60] sm:$0xff] (!%p6142_p13), %vm328_vm1, %v341_v59  ;;  %v5965_v61 = vld [vmem:[#allocation2 + $0x50] sm:$0xff] (!%p6142_p13) }
  0xad   : > { %v8024_v60 = vpack.c.bf16 (!%p6142_p13), %v761_v53, %v758_v52  ;;  %356 = vst.msk [vmem:[#allocation4 + $0x50] sm:$0xff] (!%p6142_p13), %vm328_vm1, %v339_v58  ;;  %v5967_v62 = vld [vmem:[#allocation2 + $0x60] sm:$0xff] (!%p6142_p13)  ;;  %v5969_v63 = vld [vmem:[#allocation2 + $0x70] sm:$0xff] (!%p6142_p13)  ;;  %v8029_v0 = vsub.f32 (!%p6142_p13), %v707_v49, %v758_v52  ;;  %v8031_v1 = vsub.f32 (!%p6142_p13), %v708_v50, %v761_v53  ;;  %362 = vst.msk [vmem:[#allocation4 + $0x80] sm:$0xff] (!%p6142_p13), %vm328_vm1, %v5965_v61 }
  0xae   : > { %v322_v51 = vld [vmem:[#allocation3] sm:$0xff] (!%p6142_p13)  ;;  %364 = vst.msk [vmem:[#allocation4 + $0x90] sm:$0xff] (!%p6142_p13), %vm328_vm1, %v5967_v62  ;;  %366 = vst.msk [vmem:[#allocation4 + $0xa0] sm:$0xff] (!%p6142_p13), %vm328_vm1, %v5969_v63  ;;  %v336_v5 = vld [vmem:[#allocation2 + $0x8] sm:$0xff] (!%p6142_p13) }
  0xaf   : > { %v324_v54 = vld [vmem:[#allocation3 + $0x10] sm:$0xff] (!%p6142_p13)  ;;  %329 = vst.msk [vmem:[#allocation4] sm:$0xff] (!%p6142_p13), %vm328_vm1, %v322_v51  ;;  %5971 = vst.msk [vmem:[#allocation3] sm:$0xff] (!%p6142_p13), %vm328_vm1, %v5965_v61  ;;  %v323_v2 = vld [vmem:[#allocation3 + $0x8] sm:$0xff] (!%p6142_p13)  ;;  %6972 = vmatprep.subr.bf16.mxu0 (!%p6142_p13), %v8024_v60  ;;  %v8971_v8 = vand.u32 (!%p6142_p13), 4294901760, %v8029_v0  ;;  %v8970_v9 = vand.u32 (!%p6142_p13), 4294901760, %v8031_v1 }
  0xb0   : > { %v326_v55 = vld [vmem:[#allocation3 + $0x20] sm:$0xff] (!%p6142_p13)  ;;  %331 = vst.msk [vmem:[#allocation4 + $0x10] sm:$0xff] (!%p6142_p13), %vm328_vm1, %v324_v54  ;;  %5973 = vst.msk [vmem:[#allocation3 + $0x10] sm:$0xff] (!%p6142_p13), %vm328_vm1, %v5967_v62  ;;  %v325_v3 = vld [vmem:[#allocation3 + $0x18] sm:$0xff] (!%p6142_p13)  ;;  %6974 = vmatpush3.bf16.msra.mxu0 (!%p6142_p13), %v8024_v60 }
  0xb1   : > { %333 = vst.msk [vmem:[#allocation4 + $0x20] sm:$0xff] (!%p6142_p13), %vm328_vm1, %v326_v55  ;;  %5975 = vst.msk [vmem:[#allocation3 + $0x20] sm:$0xff] (!%p6142_p13), %vm328_vm1, %v5969_v63  ;;  %v327_v4 = vld [vmem:[#allocation3 + $0x28] sm:$0xff] (!%p6142_p13)  ;;  %v338_v6 = vld [vmem:[#allocation2 + $0x18] sm:$0xff] (!%p6142_p13)  ;;  %v988_v17 = vsub.f32 (!%p6142_p13), %v8029_v0, %v8971_v8  ;;  %v995_v18 = vsub.f32 (!%p6142_p13), %v8031_v1, %v8970_v9 }
  0xb2   : > { %s8022_s30 = scalar_select %p319_p0, 1, 0  ;;  %330 = vst.msk [vmem:[#allocation4 + $0x8] sm:$0xff] %vm328_vm1, %v323_v2  ;;  %332 = vst.msk [vmem:[#allocation4 + $0x18] sm:$0xff] %vm328_vm1, %v325_v3  ;;  %v340_v7 = vld [vmem:[#allocation2 + $0x28] sm:$0xff]  ;;  %v342_v10 = vld [vmem:[#allocation2 + $0x38] sm:$0xff] }
  0xb3   : > { %334 = vst.msk [vmem:[#allocation4 + $0x28] sm:$0xff] %vm328_vm1, %v327_v4  ;;  %353 = vst.msk [vmem:[#allocation4 + $0x38] sm:$0xff] %vm328_vm1, %v336_v5  ;;  %v5966_v11 = vld [vmem:[#allocation2 + $0x58] sm:$0xff]  ;;  %v5968_v12 = vld [vmem:[#allocation2 + $0x68] sm:$0xff]  ;;  %v989_v30 = vand.u32 4294901760, %v988_v17  ;;  %v996_v54 = vand.u32 4294901760, %v995_v18 }
  0xb4   : > { %s321_s29 = scvt.s32.f32 %s8022_s30  ;;  %355 = vst.msk [vmem:[#allocation4 + $0x48] sm:$0xff] %vm328_vm1, %v338_v6  ;;  %357 = vst.msk [vmem:[#allocation4 + $0x58] sm:$0xff] %vm328_vm1, %v340_v7  ;;  %v5970_v14 = vld [vmem:[#allocation2 + $0x78] sm:$0xff]  ;;  %v343_v15 = vld [vmem:[#allocation2 + $0x40] sm:$0xff] }
  0xb5   : > { %359 = vst.msk [vmem:[#allocation4 + $0x68] sm:$0xff] %vm328_vm1, %v342_v10  ;;  %5972 = vst.msk [vmem:[#allocation3 + $0x8] sm:$0xff] %vm328_vm1, %v5966_v11  ;;  %v344_v16 = vld [vmem:[#allocation2 + $0x48] sm:$0xff]  ;;  %v8073_v29 = vld [vmem:[#allocation4 + $0x30] sm:$0xff]  ;;  %v8099_v2 = vpack.c.bf16 %v996_v54, %v989_v30 }
  0xb6   : > { %v368_v13 = vstv %s321_s29  ;;  %5974 = vst.msk [vmem:[#allocation3 + $0x18] sm:$0xff] %vm328_vm1, %v5968_v12  ;;  %363 = vst.msk [vmem:[#allocation4 + $0x88] sm:$0xff] %vm328_vm1, %v5966_v11  ;;  %v382_v21 = vld [vmem:[#allocation4] sm:$0xff]  ;;  %v528_v49 = vmul.f32 0.25603834, %v8073_v29  ;;  %v8085_v51 = vld [vmem:[#allocation4 + $0x50] sm:$0xff] }
  0xb7   : > { %365 = vst.msk [vmem:[#allocation4 + $0x98] sm:$0xff] %vm328_vm1, %v5968_v12  ;;  %v369_v19 = vmul.f32 %v368_v13, %v7980_v31  ;;  %v370_v20 = vmul.f32 %v368_v13, %v7982_v33  ;;  %5976 = vst.msk [vmem:[#allocation3 + $0x28] sm:$0xff] %vm328_vm1, %v5970_v14  ;;  %v371_v22 = vmul.f32 %v368_v13, %v7984_v34  ;;  %v398_v26 = vmul.f32 0.044146545, %v382_v21  ;;  %v415_v27 = vld [vmem:[#allocation4 + $0x10] sm:$0xff]  ;;  %v8083_v50 = vld [vmem:[#allocation4 + $0x40] sm:$0xff] }
  0xb8   : > { %360 = vst.msk [vmem:[#allocation4 + $0x70] sm:$0xff] %vm328_vm1, %v343_v15  ;;  %361 = vst.msk [vmem:[#allocation4 + $0x78] sm:$0xff] %vm328_vm1, %v344_v16  ;;  %v372_v23 = vmul.f32 %v368_v13, %v7986_v35  ;;  %v373_v24 = vmul.f32 %v368_v13, %v7988_v36  ;;  %v374_v25 = vmul.f32 %v368_v13, %v7990_v37  ;;  %v8071_v28 = vld [vmem:[#allocation4 + $0x20] sm:$0xff]  ;;  %v431_v32 = vmul.f32 0.11722289, %v415_v27 }
  0xb9   : > { %367 = vst.msk [vmem:[#allocation4 + $0xa8] sm:$0xff] %vm328_vm1, %v5970_v14  ;;  %376 = vst.msk [vmem:[#allocation4 + $0xb0] sm:$0xff] %vm328_vm1, %v369_v19  ;;  %v480_v48 = vmul.f32 0.21061139, %v8071_v28  ;;  %v8087_v52 = vld [vmem:[#allocation4 + $0x60] sm:$0xff]  ;;  %v383_v59 = vld [vmem:[#allocation4 + $0x8] sm:$0xff]  ;;  %6976 = vmatprep.subr.bf16.mxu0 %v8099_v2  ;;  %v8111_v14 = vpack.c.bf16 %v8031_v1, %v8029_v0 }
  0xba   : > { %377 = vst.msk [vmem:[#allocation4 + $0xb8] sm:$0xff] %vm328_vm1, %v370_v20  ;;  %378 = vst.msk [vmem:[#allocation4 + $0xc0] sm:$0xff] %vm328_vm1, %v371_v22  ;;  %v400_v53 = vmul.f32 0.044146545, %v415_v27  ;;  %v447_v55 = vadd.f32 %v431_v32, %v398_v26  ;;  %v8090_v56 = vmul.f32 0.21061139, %v8083_v50 }
  0xbb   : > { %379 = vst.msk [vmem:[#allocation4 + $0xc8] sm:$0xff] %vm328_vm1, %v372_v23  ;;  %380 = vst.msk [vmem:[#allocation4 + $0xd0] sm:$0xff] %vm328_vm1, %v373_v24  ;;  %v8093_v57 = vmul.f32 0.11722289, %v8085_v51  ;;  %v8096_v58 = vmul.f32 0.044146545, %v8087_v52 }
  0xbc   : > { %381 = vst.msk [vmem:[#allocation4 + $0xd8] sm:$0xff] %vm328_vm1, %v374_v25  ;;  %v416_v61 = vld [vmem:[#allocation4 + $0x18] sm:$0xff]  ;;  %v465_v62 = vld [vmem:[#allocation4 + $0x28] sm:$0xff]  ;;  %v433_v63 = vmul.f32 0.11722289, %v8071_v28  ;;  %v496_v3 = vadd.f32 %v480_v48, %v447_v55 }
  0xbd   : > { %v399_v4 = vmul.f32 0.044146545, %v383_v59  ;;  %v432_v5 = vmul.f32 0.11722289, %v416_v61  ;;  %v481_v6 = vmul.f32 0.21061139, %v465_v62 }
  0xbe   : > { %v8101_v7 = vld [vmem:[#allocation4 + $0x38] sm:$0xff]  ;;  %v8103_v10 = vld [vmem:[#allocation4 + $0x48] sm:$0xff]  ;;  %v449_v12 = vadd.f32 %v433_v63, %v400_v53  ;;  %v482_v13 = vmul.f32 0.21061139, %v8073_v29  ;;  %v544_v15 = vadd.f32 %v528_v49, %v496_v3  ;;  %v530_v24 = vmul.f32 0.25603834, %v8083_v50 }
  0xbf   : > { %v8105_v11 = vld [vmem:[#allocation4 + $0x58] sm:$0xff]  ;;  %v448_v16 = vadd.f32 %v432_v5, %v399_v4  ;;  %v529_v17 = vmul.f32 0.25603834, %v8101_v7  ;;  %v578_v18 = vmul.f32 0.21061139, %v8103_v10  ;;  %v8115_v19 = vld [vmem:[#allocation4 + $0x68] sm:$0xff] }
  0xc0   : > { %v8117_v20 = vld [vmem:[#allocation4 + $0x70] sm:$0xff]  ;;  %v8120_v21 = vmul.f32 0.11722289, %v8105_v11  ;;  %v8123_v22 = vmul.f32 0.044146545, %v8115_v19  ;;  %v498_v23 = vadd.f32 %v482_v13, %v449_v12  ;;  %v593_v25 = vadd.f32 %v8090_v56, %v544_v15  ;;  %v8133_v32 = vld [vmem:[#allocation4 + $0x78] sm:$0xff] }
  0xc1   : > { %v497_v26 = vadd.f32 %v481_v6, %v448_v16  ;;  %v8128_v27 = vmul.f32 0.21061139, %v8085_v51  ;;  %v8131_v30 = vmul.f32 0.11722289, %v8087_v52  ;;  %v8136_v49 = vmul.f32 0.044146545, %v8117_v20 }
  0xc2   : > { %v546_v48 = vadd.f32 %v530_v24, %v498_v23  ;;  %v401_v53 = vmul.f32 0.044146545, %v416_v61  ;;  %v434_v54 = vmul.f32 0.11722289, %v465_v62  ;;  %v642_v55 = vadd.f32 %v8093_v57, %v593_v25  ;;  %v8186_v44 = vld [vmem:[#allocation4 + $0x88] sm:$0xff] }
  0xc3   : > { %v545_v59 = vadd.f32 %v529_v17, %v497_v26  ;;  %v483_v63 = vmul.f32 0.21061139, %v8101_v7  ;;  %v531_v3 = vmul.f32 0.25603834, %v8103_v10  ;;  %v8143_v6 = vmul.f32 0.21061139, %v8105_v11 }
  0xc4   : > { %v595_v4 = vadd.f32 %v8128_v27, %v546_v48  ;;  %v450_v5 = vadd.f32 %v434_v54, %v401_v53  ;;  %v8146_v12 = vmul.f32 0.11722289, %v8115_v19  ;;  %v691_v13 = vadd.f32 %v8096_v58, %v642_v55  ;;  %v8156_v26 = vld [vmem:[#allocation4 + $0x80] sm:$0xff] }
  0xc5   : > { %v594_v61 = vadd.f32 %v578_v18, %v545_v59  ;;  %v8150_v15 = vmul.f32 0.044146545, %v8133_v32  ;;  %v402_v16 = vmul.f32 0.044146545, %v8071_v28  ;;  %v435_v24 = vmul.f32 0.11722289, %v8073_v29 }
  0xc6   : > { %v644_v17 = vadd.f32 %v8131_v30, %v595_v4  ;;  %v499_v23 = vadd.f32 %v483_v63, %v450_v5  ;;  %v532_v25 = vmul.f32 0.25603834, %v8085_v51  ;;  %v710_v48 = vsel %vm328_vm1, %v691_v13, 0 }
  0xc7   : > { %v643_v53 = vadd.f32 %v8120_v21, %v594_v61  ;;  %v8161_v54 = vmul.f32 0.21061139, %v8087_v52  ;;  %v8164_v55 = vmul.f32 0.11722289, %v8117_v20  ;;  %v8166_v28 = vand.u32 4294901760, %v710_v48 }
  0xc8   : > { %v693_v59 = vadd.f32 %v8136_v49, %v644_v17  ;;  %v547_v63 = vadd.f32 %v531_v3, %v499_v23  ;;  %v451_v4 = vadd.f32 %v435_v24, %v402_v16  ;;  %v679_v9 = vmul.f32 0.044146545, %v8156_v26 }
  0xc9   : > { %v692_v5 = vadd.f32 %v8123_v22, %v643_v53  ;;  %v403_v8 = vmul.f32 0.044146545, %v465_v62  ;;  %v436_v13 = vmul.f32 0.11722289, %v8101_v7  ;;  %v8173_v61 = vsub.f32 %v710_v48, %v8166_v28 }
  0xca   : > { %v716_v47 = vsel %vm328_vm1, %v693_v59, 0  ;;  %v596_v46 = vadd.f32 %v8143_v6, %v547_v63  ;;  %v500_v45 = vadd.f32 %v8090_v56, %v451_v4  ;;  %v533_v23 = vmul.f32 0.25603834, %v8105_v11 }
  0xcb   : > { %v713_v17 = vsel %vm328_vm1, %v692_v5, 0  ;;  %v8179_v3 = vand.u32 4294901760, %v716_v47  ;;  %v452_v16 = vadd.f32 %v436_v13, %v403_v8  ;;  %v8972_v62 = vand.u32 4294901760, %v8173_v61 }
  0xcc   : > { %v8183_v24 = vand.u32 4294901760, %v713_v17  ;;  %v645_v48 = vadd.f32 %v8146_v12, %v596_v46  ;;  %v548_v53 = vadd.f32 %v532_v25, %v500_v45  ;;  %v8192_v63 = vmul.f32 0.21061139, %v8115_v19 }
  0xcd   : > { %v8189_v59 = vsub.f32 %v716_v47, %v8179_v3  ;;  %v501_v56 = vadd.f32 %v578_v18, %v452_v16  ;;  %v8195_v8 = vmul.f32 0.11722289, %v8133_v32  ;;  %v827_v4 = vsub.f32 %v8173_v61, %v8972_v62 }
  0xce   : > { %v8201_v5 = vsub.f32 %v713_v17, %v8183_v24  ;;  %v694_v45 = vadd.f32 %v8150_v15, %v645_v48  ;;  %v597_v46 = vadd.f32 %v8161_v54, %v548_v53  ;;  %v680_v25 = vmul.f32 0.044146545, %v8186_v44 }
  0xcf   : > { %v8973_v47 = vand.u32 4294901760, %v8189_v59  ;;  %v549_v18 = vadd.f32 %v533_v23, %v501_v56  ;;  %v404_v13 = vmul.f32 0.044146545, %v8073_v29  ;;  %v828_v16 = vand.u32 4294901760, %v827_v4  ;;  %v8218_v56 = vld [vmem:[#allocation4 + $0x90] sm:$0xff] }
  0xd0   : > { %v8974_v43 = vand.u32 4294901760, %v8201_v5  ;;  %v719_v42 = vsel %vm328_vm1, %v694_v45, 0  ;;  %v646_v62 = vadd.f32 %v8164_v55, %v597_v46  ;;  %v437_v23 = vmul.f32 0.11722289, %v8083_v50 }
  0xd1   : > { %v847_v17 = vsub.f32 %v8189_v59, %v8973_v47  ;;  %v8214_v48 = vand.u32 4294901760, %v719_v42  ;;  %v598_v53 = vadd.f32 %v8192_v63, %v549_v18  ;;  %6471 = vmatprep.mubr.f32.mxu0 %v828_v16  ;;  %v534_v45 = vmul.f32 0.25603834, %v8087_v52 }
  0xd2   : > { %v837_v29 = vsub.f32 %v8201_v5, %v8974_v43  ;;  %v695_v4 = vadd.f32 %v679_v9, %v646_v62  ;;  %v8225_v46 = vmul.f32 0.21061139, %v8117_v20  ;;  %v453_v40 = vadd.f32 %v437_v23, %v404_v13 }
  0xd3   : > { %v848_v47 = vand.u32 4294901760, %v847_v17  ;;  %v8228_v41 = vsub.f32 %v719_v42, %v8214_v48  ;;  %v647_v18 = vadd.f32 %v8195_v8, %v598_v53  ;;  %v8233_v38 = vmul.f32 0.11722289, %v8156_v26  ;;  %v8240_v42 = vld [vmem:[#allocation4 + $0x98] sm:$0xff] }
  0xd4   : > { %v838_v39 = vand.u32 4294901760, %v837_v29  ;;  %v722_v16 = vsel %vm328_vm1, %v695_v4, 0  ;;  %v681_v9 = vmul.f32 0.044146545, %v8218_v56  ;;  %v502_v17 = vadd.f32 %v8128_v27, %v453_v40 }
  0xd5   : > { %v8975_v52 = vand.u32 4294901760, %v8228_v41  ;;  %v8237_v62 = vand.u32 4294901760, %v722_v16  ;;  %v696_v43 = vadd.f32 %v680_v25, %v647_v18  ;;  %v405_v13 = vmul.f32 0.044146545, %v8101_v7 }
  0xd6   : > { %6472 = vmatmul.mubr.f32.vlgmr.msra.gmra.mrb[0].mxu0 %v838_v39  ;;  %v438_v53 = vmul.f32 0.11722289, %v8103_v10  ;;  %v535_v23 = vmul.f32 0.25603834, %v8115_v19  ;;  %v8247_v29 = vadd.f32 %v8096_v58, %v8164_v55  ;;  %v550_v7 = vadd.f32 %v534_v45, %v502_v17 }
  0xd7   : > { %6474 = vmatprep.mubr.f32.mxu0 %v848_v47  ;;  %v857_v25 = vsub.f32 %v8228_v41, %v8975_v52  ;;  %6978 = vmatpush3.bf16.msra.mxu0 %v8099_v2  ;;  %v8254_v40 = vsub.f32 %v722_v16, %v8237_v62  ;;  %v725_v39 = vsel %vm328_vm1, %v696_v43, 0  ;;  %v8260_v4 = vmul.f32 0.21061139, %v8133_v32  ;;  %v8269_v43 = vld [vmem:[#allocation4 + $0xa0] sm:$0xff] }
  0xd8   : > { %v8257_v27 = vand.u32 4294901760, %v725_v39  ;;  %v454_v19 = vadd.f32 %v438_v53, %v405_v13  ;;  %v8263_v58 = vmul.f32 0.11722289, %v8186_v44  ;;  %6980 = vmatprep.subr.bf16.mxu0 %v8111_v14  ;;  %v599_v47 = vadd.f32 %v8225_v46, %v550_v7 }
  0xd9   : > { %v858_v55 = vand.u32 4294901760, %v857_v25  ;;  %v8978_v2 = vand.u32 4294901760, %v8254_v40  ;;  %v682_v18 = vmul.f32 0.044146545, %v8240_v42  ;;  %v406_v17 = vmul.f32 0.044146545, %v8083_v50 }
  0xda   : > { %v8272_v45 = vsub.f32 %v725_v39, %v8257_v27  ;;  %v503_v16 = vadd.f32 %v8143_v6, %v454_v19  ;;  %v536_v13 = vmul.f32 0.25603834, %v8117_v20  ;;  %v648_v25 = vadd.f32 %v8233_v38, %v599_v47  ;;  %v8286_v19 = vld [vmem:[#allocation4 + $0xa8] sm:$0xff] }
  0xdb   : > { %6475 = vmatmul.mubr.f32.gmra.mrb[2].mxu0 %v858_v55  ;;  %v867_v53 = vsub.f32 %v8254_v40, %v8978_v2  ;;  %v585_v7 = vmul.f32 0.21061139, %v8156_v26  ;;  %v634_v52 = vmul.f32 0.11722289, %v8218_v56  ;;  %v455_v6 = vadd.f32 %v8093_v57, %v406_v17 }
  0xdc   : > { %v8980_v39 = vand.u32 4294901760, %v8272_v45  ;;  %v551_v37 = vadd.f32 %v535_v23, %v503_v16  ;;  %v683_v50 = vmul.f32 0.044146545, %v8269_v43  ;;  %v697_v55 = vadd.f32 %v681_v9, %v648_v25 }
  0xdd   : > { %v868_v20 = vand.u32 4294901760, %v867_v53  ;;  %v407_v36 = vmul.f32 0.044146545, %v8103_v10  ;;  %v537_v2 = vmul.f32 0.25603834, %v8133_v32  ;;  %v504_v23 = vadd.f32 %v8161_v54, %v455_v6 }
  0xde   : > { %v877_v47 = vsub.f32 %v8272_v45, %v8980_v39  ;;  %v600_v35 = vadd.f32 %v8260_v4, %v551_v37  ;;  %v8296_v57 = vmul.f32 0.21061139, %v8186_v44  ;;  %v728_v16 = vsel %vm328_vm1, %v697_v55, 0  ;;  %v8305_v39 = vld [vmem:[#allocation4 + $0xb0] sm:$0xff] }
  0xdf   : > { %6477 = vmatprep.mubr.f32.mxu0 %v868_v20  ;;  %v456_v9 = vadd.f32 %v8120_v21, %v407_v36  ;;  %v635_v10 = vmul.f32 0.11722289, %v8240_v42  ;;  %v684_v32 = vmul.f32 0.044146545, %v8286_v19  ;;  %v8302_v53 = vand.u32 4294901760, %v728_v16 }
  0xe0   : > { %v878_v17 = vand.u32 4294901760, %v877_v47  ;;  %v649_v25 = vadd.f32 %v8263_v58, %v600_v35  ;;  %v552_v37 = vadd.f32 %v536_v13, %v504_v23  ;;  %v408_v6 = vmul.f32 0.044146545, %v8085_v51 }
  0xe1   : > { %v505_v54 = vadd.f32 %v8192_v63, %v456_v9  ;;  %v538_v20 = vmul.f32 0.25603834, %v8156_v26  ;;  %v8311_v36 = vmul.f32 0.21061139, %v8218_v56  ;;  %v8314_v21 = vsub.f32 %v728_v16, %v8302_v53 }
  0xe2   : > { %6478 = vmatmul.mubr.f32.gmra.mrb[4].mxu0 %v878_v17  ;;  %v698_v55 = vadd.f32 %v682_v18, %v649_v25  ;;  %v601_v47 = vadd.f32 %v585_v7, %v552_v37  ;;  %v636_v35 = vmul.f32 0.11722289, %v8269_v43  ;;  %v457_v23 = vadd.f32 %v8131_v30, %v408_v6  ;;  %v8328_v30 = vld [vmem:[#allocation4 + $0xb8] sm:$0xff] }
  0xe3   : > { %v553_v13 = vadd.f32 %v537_v2, %v505_v54  ;;  %v685_v63 = vmul.f32 0.044146545, %v8305_v39  ;;  %v409_v51 = vmul.f32 0.044146545, %v8105_v11  ;;  %v8982_v26 = vand.u32 4294901760, %v8314_v21 }
  0xe4   : > { %v731_v9 = vsel %vm328_vm1, %v698_v55, 0  ;;  %v650_v34 = vadd.f32 %v634_v52, %v601_v47  ;;  %v539_v17 = vmul.f32 0.25603834, %v8186_v44  ;;  %v506_v25 = vadd.f32 %v8225_v46, %v457_v23 }
  0xe5   : > { %v8323_v16 = vand.u32 4294901760, %v731_v9  ;;  %v602_v18 = vadd.f32 %v8296_v57, %v553_v13  ;;  %v458_v2 = vadd.f32 %v8146_v12, %v409_v51  ;;  %v887_v11 = vsub.f32 %v8314_v21, %v8982_v26 }
  0xe6   : > { %v699_v37 = vadd.f32 %v683_v50, %v650_v34  ;;  %v8334_v54 = vmul.f32 0.21061139, %v8240_v42  ;;  %v637_v44 = vmul.f32 0.11722289, %v8286_v19  ;;  %v554_v55 = vadd.f32 %v538_v20, %v506_v25 }
  0xe7   : > { %v8338_v52 = vsub.f32 %v731_v9, %v8323_v16  ;;  %v651_v6 = vadd.f32 %v635_v10, %v602_v18  ;;  %v507_v46 = vadd.f32 %v8260_v4, %v458_v2  ;;  %v888_v12 = vand.u32 4294901760, %v887_v11  ;;  %v671_v9 = vld [vmem:[#allocation4 + $0xc0] sm:$0xff] }
  0xe8   : > { %v734_v47 = vsel %vm328_vm1, %v699_v37, 0  ;;  %v686_v13 = vmul.f32 0.044146545, %v8328_v30  ;;  %v508_v23 = vadd.f32 %v585_v7, %v8247_v29  ;;  %v603_v26 = vadd.f32 %v8311_v36, %v554_v55 }
  0xe9   : > { %v8983_v34 = vand.u32 4294901760, %v8338_v52  ;;  %v8345_v50 = vand.u32 4294901760, %v734_v47  ;;  %v700_v51 = vadd.f32 %v684_v32, %v651_v6  ;;  %6480 = vmatprep.mubr.f32.mxu0 %v888_v12  ;;  %v555_v10 = vadd.f32 %v539_v17, %v507_v46 }
  0xea   : > { %v540_v20 = vmul.f32 0.25603834, %v8218_v56  ;;  %v589_v4 = vmul.f32 0.21061139, %v8269_v43  ;;  %v638_v18 = vmul.f32 0.11722289, %v8305_v39  ;;  %v652_v25 = vadd.f32 %v636_v35, %v603_v26 }
  0xeb   : > { %v897_v29 = vsub.f32 %v8338_v52, %v8983_v34  ;;  %v8355_v7 = vsub.f32 %v734_v47, %v8345_v50  ;;  %v737_v32 = vsel %vm328_vm1, %v700_v51, 0  ;;  %v604_v17 = vadd.f32 %v8334_v54, %v555_v10  ;;  %v672_v26 = vld [vmem:[#allocation4 + $0xc8] sm:$0xff] }
  0xec   : > { %v8358_v2 = vand.u32 4294901760, %v737_v32  ;;  %v556_v11 = vadd.f32 %v540_v20, %v508_v23  ;;  %v687_v56 = vmul.f32 0.044146545, %v671_v9  ;;  %v701_v55 = vadd.f32 %v685_v63, %v652_v25 }
  0xed   : > { %v898_v37 = vand.u32 4294901760, %v897_v29  ;;  %v906_v6 = vand.u32 4294901760, %v8355_v7  ;;  %v460_v46 = vadd.f32 %v8123_v22, %v8195_v8  ;;  %v653_v47 = vadd.f32 %v637_v44, %v604_v17 }
  0xee   : > { %v8365_v12 = vsub.f32 %v737_v32, %v8358_v2  ;;  %v605_v34 = vadd.f32 %v589_v4, %v556_v11  ;;  %v541_v35 = vmul.f32 0.25603834, %v8240_v42  ;;  %v740_v51 = vsel %vm328_vm1, %v701_v55, 0  ;;  %v673_v55 = vld [vmem:[#allocation4 + $0xd0] sm:$0xff] }
  0xef   : > { %6481 = vmatmul.mubr.f32.gmra.mrb[6].mxu0 %v898_v37  ;;  %v907_v23 = vsub.f32 %v8355_v7, %v906_v6  ;;  %v509_v63 = vadd.f32 %v8296_v57, %v460_v46  ;;  %v590_v10 = vmul.f32 0.21061139, %v8286_v19  ;;  %v8375_v8 = vand.u32 4294901760, %v740_v51 }
  0xf0   : > { %v916_v22 = vand.u32 4294901760, %v8365_v12  ;;  %v702_v44 = vadd.f32 %v686_v13, %v653_v47  ;;  %v654_v20 = vadd.f32 %v638_v18, %v605_v34  ;;  %v639_v29 = vmul.f32 0.11722289, %v8328_v30 }
  0xf1   : > { %v908_v4 = vand.u32 4294901760, %v907_v23  ;;  %v557_v42 = vadd.f32 %v541_v35, %v509_v63  ;;  %v688_v32 = vmul.f32 0.044146545, %v672_v26  ;;  %v8382_v17 = vsub.f32 %v740_v51, %v8375_v8 }
  0xf2   : > { %v917_v25 = vsub.f32 %v8365_v12, %v916_v22  ;;  %v743_v57 = vsel %vm328_vm1, %v702_v44, 0  ;;  %v703_v11 = vadd.f32 %v687_v56, %v654_v20  ;;  %v461_v34 = vadd.f32 %v8136_v49, %v8233_v38 }
  0xf3   : > { %6483 = vmatprep.mubr.f32.mxu0 %v908_v4  ;;  %v8385_v37 = vand.u32 4294901760, %v743_v57  ;;  %v606_v13 = vadd.f32 %v590_v10, %v557_v42  ;;  %v542_v18 = vmul.f32 0.25603834, %v8269_v43  ;;  %v926_v47 = vand.u32 4294901760, %v8382_v17 }
  0xf4   : > { %v918_v46 = vand.u32 4294901760, %v917_v25  ;;  %v746_v35 = vsel %vm328_vm1, %v703_v11, 0  ;;  %v591_v23 = vmul.f32 0.21061139, %v8305_v39  ;;  %v510_v10 = vadd.f32 %v8311_v36, %v461_v34 }
  0xf5   : > { %v8394_v51 = vsub.f32 %v743_v57, %v8385_v37  ;;  %v8396_v56 = vand.u32 4294901760, %v746_v35  ;;  %v655_v63 = vadd.f32 %v639_v29, %v606_v13  ;;  %v927_v38 = vsub.f32 %v8382_v17, %v926_v47  ;;  %v674_v13 = vld [vmem:[#allocation4 + $0xd8] sm:$0xff] }
  0xf6   : > { %6484 = vmatmul.mubr.f32.gmra.mrb[8].mxu0 %v918_v46  ;;  %v640_v49 = vmul.f32 0.11722289, %v671_v9  ;;  %v689_v43 = vmul.f32 0.044146545, %v673_v55  ;;  %v462_v44 = vadd.f32 %v8150_v15, %v8263_v58  ;;  %v558_v42 = vadd.f32 %v542_v18, %v510_v10 }
  0xf7   : > { %v936_v39 = vand.u32 4294901760, %v8394_v51  ;;  %v8406_v20 = vsub.f32 %v746_v35, %v8396_v56  ;;  %v704_v4 = vadd.f32 %v688_v32, %v655_v63  ;;  %v928_v29 = vand.u32 4294901760, %v927_v38 }
  0xf8   : > { %v511_v36 = vadd.f32 %v8334_v54, %v462_v44  ;;  %v543_v25 = vmul.f32 0.25603834, %v8286_v19  ;;  %v592_v57 = vmul.f32 0.21061139, %v8328_v30  ;;  %v607_v11 = vadd.f32 %v591_v23, %v558_v42 }
  0xf9   : > { %v937_v9 = vsub.f32 %v8394_v51, %v936_v39  ;;  %v946_v15 = vand.u32 4294901760, %v8406_v20  ;;  %v749_v58 = vsel %vm328_vm1, %v704_v4, 0  ;;  %6486 = vmatprep.mubr.f32.mxu0 %v928_v29  ;;  %v641_v18 = vmul.f32 0.11722289, %v672_v26 }
  0xfa   : > { %v8416_v32 = vand.u32 4294901760, %v749_v58  ;;  %v559_v34 = vadd.f32 %v543_v25, %v511_v36  ;;  %v656_v30 = vadd.f32 %v640_v49, %v607_v11  ;;  %v690_v35 = vmul.f32 0.044146545, %v674_v13 }
  0xfb   : > { %v938_v54 = vand.u32 4294901760, %v937_v9  ;;  %v947_v19 = vsub.f32 %v8406_v20, %v946_v15 }
  0xfc   : > { %v8422_v55 = vsub.f32 %v749_v58, %v8416_v32  ;;  %v608_v46 = vadd.f32 %v592_v57, %v559_v34  ;;  %v705_v23 = vadd.f32 %v689_v43, %v656_v30  ;;  %v9030_v30 = vand.u32 4294901760, %v8228_v41 }
  0xfd   : > { %6487 = vmatmul.mubr.f32.gmra.mrb[10].mxu0 %v938_v54  ;;  %v948_v63 = vand.u32 4294901760, %v947_v19  ;;  %v9029_v19 = vand.u32 4294901760, %v8189_v59 }
  0xfe   : > { %v956_v10 = vand.u32 4294901760, %v8422_v55  ;;  %v657_v38 = vadd.f32 %v641_v18, %v608_v46  ;;  %v752_v26 = vsel %vm328_vm1, %v705_v23, 0  ;;  %v9026_v18 = vand.u32 4294901760, %v8031_v1 }
  0xff   : > { %6489 = vmatprep.mubr.f32.mxu0 %v948_v63  ;;  %v8429_v4 = vand.u32 4294901760, %v752_v26  ;;  %v9028_v1 = vand.u32 4294901760, %v8201_v5  ;;  %v9031_v46 = vand.u32 4294901760, %v8254_v40 }
 0x100   : > { %v957_v44 = vsub.f32 %v8422_v55, %v956_v10  ;;  %v706_v49 = vadd.f32 %v690_v35, %v657_v38  ;;  %v9032_v35 = vand.u32 4294901760, %v8272_v45 }
 0x101   : > { %v8432_v29 = vsub.f32 %v752_v26, %v8429_v4 }
 0x102   : > { %v958_v42 = vand.u32 4294901760, %v957_v44  ;;  %v755_v36 = vsel %vm328_vm1, %v706_v49, 0 }
 0x103   : > { %v8435_v43 = vand.u32 4294901760, %v755_v36  ;;  %v966_v25 = vand.u32 4294901760, %v8432_v29 }
 0x104   : > { %6490 = vmatmul.mubr.f32.gmra.mrb[12].mxu0 %v958_v42 }
 0x105   : > { %v975_v57 = vsub.f32 %v755_v36, %v8435_v43  ;;  %v967_v9 = vsub.f32 %v8432_v29, %v966_v25 }
 0x107   : > { %v976_v58 = vand.u32 4294901760, %v975_v57  ;;  %v968_v11 = vand.u32 4294901760, %v967_v9 }
 0x109   : > { %v977_v13 = vsub.f32 %v975_v57, %v976_v58  ;;  %6492 = vmatprep.mubr.f32.mxu0 %v968_v11 }
 0x10b   : > { %v978_v34 = vand.u32 4294901760, %v977_v13 }
 0x10d   : > { %6493 = vmatmul.mubr.f32.gmra.mrb[14].mxu0 %v978_v34 }
 0x10e   : > { %6499 = vmatprep.mubr.f32.mxu0 %v8166_v28 }
 0x111   : > { %6500 = vmatmul.mubr.f32.vlgmr.msra.gmra.mrb[0].mxu0 %v8183_v24 }
 0x112   : > { %6502 = vmatprep.mubr.f32.mxu0 %v8179_v3  ;;  %6982 = vmatpush3.bf16.msra.mxu0 %v8111_v14  ;;  %v9025_v14 = vand.u32 4294901760, %v8029_v0  ;;  %v9027_v0 = vand.u32 4294901760, %v8173_v61 }
 0x113   : > { %6984 = vmatprep.subr.bf16.mxu0 %v8024_v60 }
 0x114   : > { %v6987_v54 = vpack.c.bf16 %v9026_v18, %v9025_v14 }
 0x115   : > { %6503 = vmatmul.mubr.f32.gmra.mrb[2].mxu0 %v8214_v48 }
 0x116   : > { %6505 = vmatprep.mubr.f32.mxu0 %v8237_v62 }
 0x119   : > { %6506 = vmatmul.mubr.f32.gmra.mrb[4].mxu0 %v8257_v27 }
 0x11a   : > { %6508 = vmatprep.mubr.f32.mxu0 %v8302_v53 }
 0x11d   : > { %6509 = vmatmul.mubr.f32.gmra.mrb[6].mxu0 %v8323_v16 }
 0x11e   : > { %6511 = vmatprep.mubr.f32.mxu0 %v8345_v50 }
 0x121   : > { %6512 = vmatmul.mubr.f32.gmra.mrb[8].mxu0 %v8358_v2 }
 0x122   : > { %6514 = vmatprep.mubr.f32.mxu0 %v8375_v8 }
 0x125   : > { %6515 = vmatmul.mubr.f32.gmra.mrb[10].mxu0 %v8385_v37 }
 0x126   : > { %6517 = vmatprep.mubr.f32.mxu0 %v8396_v56 }
 0x129   : > { %6518 = vmatmul.mubr.f32.gmra.mrb[12].mxu0 %v8416_v32 }
 0x12a   : > { %6520 = vmatprep.mubr.f32.mxu0 %v8429_v4 }
 0x12d   : > { %6521 = vmatmul.mubr.f32.gmra.mrb[14].mxu0 %v8435_v43 }
 0x12e   : > { %6527 = vmatprep.mubr.f32.mxu0 %v8173_v61  ;;  %v9033_v61 = vand.u32 4294901760, %v8314_v21 }
 0x131   : > { %6528 = vmatmul.mubr.f32.vlgmr.msra.gmra.mrb[0].mxu0 %v8201_v5  ;;  %v9034_v5 = vand.u32 4294901760, %v8338_v52 }
 0x132   : > { %6530 = vmatprep.mubr.f32.mxu0 %v8189_v59  ;;  %6986 = vmatpush3.bf16.msra.mxu0 %v8024_v60 }
 0x133   : > { %6988 = vmatprep.subr.bf16.mxu0 %v6987_v54 }
 0x135   : > { %6531 = vmatmul.mubr.f32.gmra.mrb[2].mxu0 %v8228_v41  ;;  %v1861_v41 = vld [vmem:[#allocation8] sm:$0xff] }
 0x136   : > { %6533 = vmatprep.mubr.f32.mxu0 %v8254_v40 }
 0x139   : > { %6534 = vmatmul.mubr.f32.gmra.mrb[4].mxu0 %v8272_v45 }
 0x13a   : > { %6536 = vmatprep.mubr.f32.mxu0 %v8314_v21 }
 0x13d   : > { %6537 = vmatmul.mubr.f32.gmra.mrb[6].mxu0 %v8338_v52 }
 0x13e   : > { %6539 = vmatprep.mubr.f32.mxu0 %v8355_v7 }
 0x141   : > { %6540 = vmatmul.mubr.f32.gmra.mrb[8].mxu0 %v8365_v12 }
 0x142   : > { %6542 = vmatprep.mubr.f32.mxu0 %v8382_v17 }
 0x145   : > { %6543 = vmatmul.mubr.f32.gmra.mrb[10].mxu0 %v8394_v51 }
 0x146   : > { %6545 = vmatprep.mubr.f32.mxu0 %v8406_v20 }
 0x149   : > { %6546 = vmatmul.mubr.f32.gmra.mrb[12].mxu0 %v8422_v55 }
 0x14a   : > { %6548 = vmatprep.mubr.f32.mxu0 %v8432_v29 }
 0x14d   : > { %6549 = vmatmul.mubr.f32.gmra.mrb[14].mxu0 %v975_v57 }
 0x14e   : > { %6555 = vmatprep.mubr.f32.mxu0 %v9027_v0 }
 0x151   : > { %6556 = vmatmul.mubr.f32.vlgmr.msra.gmra.mrb[0].mxu0 %v9028_v1 }
 0x152   : > { %6558 = vmatprep.mubr.f32.mxu0 %v9029_v19  ;;  %6990 = vmatpush3.bf16.msra.mxu0 %v6987_v54 }
 0x153   : > { %6992 = vmatprep.subr.bf16.mxu0 %v8024_v60 }
 0x155   : > { %6559 = vmatmul.mubr.f32.gmra.mrb[2].mxu0 %v9030_v30 }
 0x156   : > { %6561 = vmatprep.mubr.f32.mxu0 %v9031_v46 }
 0x159   : > { %6562 = vmatmul.mubr.f32.gmra.mrb[4].mxu0 %v9032_v35 }
 0x15a   : > { %6564 = vmatprep.mubr.f32.mxu0 %v9033_v61 }
 0x15d   : > { %6565 = vmatmul.mubr.f32.gmra.mrb[6].mxu0 %v9034_v5 }
 0x15e   : > { %6567 = vmatprep.mubr.f32.mxu0 %v906_v6 }
 0x161   : > { %6568 = vmatmul.mubr.f32.gmra.mrb[8].mxu0 %v916_v22 }
 0x162   : > { %6570 = vmatprep.mubr.f32.mxu0 %v926_v47 }
 0x165   : > { %6571 = vmatmul.mubr.f32.gmra.mrb[10].mxu0 %v936_v39 }
 0x166   : > { %6573 = vmatprep.mubr.f32.mxu0 %v946_v15 }
 0x169   : > { %6574 = vmatmul.mubr.f32.gmra.mrb[12].mxu0 %v956_v10 }
 0x16a   : > { %6576 = vmatprep.mubr.f32.mxu0 %v966_v25 }
 0x16d   : > { %6577 = vmatmul.mubr.f32.gmra.mrb[14].mxu0 %v976_v58 }
 0x16e   : > { %6583 = vmatprep.mubr.f32.mxu0 %v8166_v28 }
 0x171   : > { %6584 = vmatmul.mubr.f32.vlgmr.msra.gmra.mrb[0].mxu0 %v8183_v24 }
 0x172   : > { %6586 = vmatprep.mubr.f32.mxu0 %v8179_v3  ;;  %6994 = vmatpush3.bf16.msra.mxu0 %v8024_v60  ;;  %v1864_v60 = vsel %vm328_vm1, %v1861_v41, 0 }
 0x175   : > { %6587 = vmatmul.mubr.f32.gmra.mrb[2].mxu0 %v8214_v48 }
 0x176   : > { %6589 = vmatprep.mubr.f32.mxu0 %v8237_v62 }
 0x179   : > { %6590 = vmatmul.mubr.f32.gmra.mrb[4].mxu0 %v8257_v27 }
 0x17a   : > { %6592 = vmatprep.mubr.f32.mxu0 %v8302_v53 }
 0x17d   : > { %6593 = vmatmul.mubr.f32.gmra.mrb[6].mxu0 %v8323_v16 }
 0x17e   : > { %6595 = vmatprep.mubr.f32.mxu0 %v8345_v50 }
 0x181   : > { %6596 = vmatmul.mubr.f32.gmra.mrb[8].mxu0 %v8358_v2 }
 0x182   : > { %6598 = vmatprep.mubr.f32.mxu0 %v8375_v8 }
 0x185   : > { %6599 = vmatmul.mubr.f32.gmra.mrb[10].mxu0 %v8385_v37 }
 0x186   : > { %6601 = vmatprep.mubr.f32.mxu0 %v8396_v56 }
 0x189   : > { %6602 = vmatmul.mubr.f32.gmra.mrb[12].mxu0 %v8416_v32 }
 0x18a   : > { %6604 = vmatprep.mubr.f32.mxu0 %v8429_v4 }
 0x18d   : > { %6605 = vmatmul.mubr.f32.gmra.mrb[14].mxu0 %v8435_v43 }
 0x18e   : > { %6611 = vmatprep.mubr.f32.mxu0 %v8166_v28  ;;  %v8541_v28 = vand.u32 4294901760, %v1864_v60 }
 0x191   : > { %6612 = vmatmul.mubr.f32.vlgmr.msra.gmra.mrb[0].mxu0 %v8183_v24 }
 0x192   : > { %6614 = vmatprep.mubr.f32.mxu0 %v8179_v3  ;;  %v8544_v3 = vsub.f32 %v1864_v60, %v8541_v28 }
 0x194   : > { %v8547_v24 = vand.u32 4294901760, %v8544_v3 }
 0x195   : > { %6615 = vmatmul.mubr.f32.gmra.mrb[2].mxu0 %v8214_v48 }
 0x196   : > { %6617 = vmatprep.mubr.f32.mxu0 %v8237_v62  ;;  %v1939_v59 = vsub.f32 %v8544_v3, %v8547_v24  ;;  %v1862_v62 = vld [vmem:[#allocation8 + $0x8] sm:$0xff] }
 0x197   : > { %v1867_v40 = vsel %vm328_vm1, %v1862_v62, 0 }
 0x198   : > { %v8551_v48 = vand.u32 4294901760, %v1939_v59 }
 0x199   : > { %6618 = vmatmul.mubr.f32.gmra.mrb[4].mxu0 %v8257_v27  ;;  %v8555_v27 = vand.u32 4294901760, %v1867_v40 }
 0x19a   : > { %6620 = vmatprep.mubr.f32.mxu0 %v8302_v53  ;;  %6639 = vmatprep.mubr.f32.mxu1 %v8551_v48 }
 0x19b   : > { %v8558_v45 = vsub.f32 %v1867_v40, %v8555_v27 }
 0x19d   : > { %6621 = vmatmul.mubr.f32.gmra.mrb[6].mxu0 %v8323_v16  ;;  %v8561_v53 = vand.u32 4294901760, %v8558_v45 }
 0x19e   : > { %6623 = vmatprep.mubr.f32.mxu0 %v8345_v50 }
 0x19f   : > { %v1949_v7 = vsub.f32 %v8558_v45, %v8561_v53 }
 0x1a1   : > { %6624 = vmatmul.mubr.f32.gmra.mrb[8].mxu0 %v8358_v2 }
 0x1a2   : > { %6626 = vmatprep.mubr.f32.mxu0 %v8375_v8 }
 0x1a5   : > { %6627 = vmatmul.mubr.f32.gmra.mrb[10].mxu0 %v8385_v37 }
 0x1a6   : > { %6629 = vmatprep.mubr.f32.mxu0 %v8396_v56  ;;  %v8568_v56 = vand.u32 4294901760, %v1949_v7 }
 0x1a9   : > { %6630 = vmatmul.mubr.f32.gmra.mrb[12].mxu0 %v8416_v32 }
 0x1aa   : > { %6632 = vmatprep.mubr.f32.mxu0 %v8429_v4 }
 0x1ad   : > { %6633 = vmatmul.mubr.f32.gmra.mrb[14].mxu0 %v8435_v43 }
 0x264   : > { %v6613_v21 = vpop.f32.mrb[0].mxu0 }
 0x265   : > { %v1873_v16 = vand.u32 4294901760, %v6613_v21  ;;  %v1767_v52 = vpop.f32.mrb[1].mxu0 }
 0x266   : > { %v1870_v50 = vand.u32 4294901760, %v1767_v52 }
 0x267   : > { %v1965_v2 = vsub.f32 %v6613_v21, %v1873_v16 }
 0x268   : > { %v8565_v6 = vpack.c.bf16 %v1873_v16, %v1870_v50  ;;  %v1958_v12 = vsub.f32 %v1767_v52, %v1870_v50  ;;  %v6616_v22 = vpop.f32.mrb[2].mxu0 }
 0x269   : > { %v1966_v8 = vand.u32 4294901760, %v1965_v2  ;;  %v2385_v17 = vand.u32 4294901760, %v6616_v22  ;;  %v1779_v37 = vpop.f32.mrb[3].mxu0 }
 0x26a   : > { %v1959_v47 = vand.u32 4294901760, %v1958_v12  ;;  %v2382_v51 = vand.u32 4294901760, %v1779_v37  ;;  %6996 = vmatprep.subr.bf16.mxu1 %v8565_v6  ;;  %v7003_v39 = vpack.c.bf16 %v1965_v2, %v1958_v12 }
 0x26b   : > { %v1967_v20 = vsub.f32 %v1965_v2, %v1966_v8  ;;  %v2477_v15 = vsub.f32 %v6616_v22, %v2385_v17  ;;  %6998 = vmatpush3.bf16.msra.mxu1 %v8565_v6 }
 0x26c   : > { %v1960_v32 = vsub.f32 %v1958_v12, %v1959_v47  ;;  %v8571_v55 = vpack.c.bf16 %v2385_v17, %v2382_v51  ;;  %v2470_v63 = vsub.f32 %v1779_v37, %v2382_v51  ;;  %v6619_v23 = vpop.f32.mrb[4].mxu0  ;;  %v8573_v10 = vpack.c.bf16 %v1966_v8, %v1959_v47 }
 0x26d   : > { %v2478_v38 = vand.u32 4294901760, %v2477_v15  ;;  %v2898_v26 = vand.u32 4294901760, %v6619_v23  ;;  %v1791_v44 = vpop.f32.mrb[5].mxu0  ;;  %v1968_v4 = vand.u32 4294901760, %v1967_v20 }
 0x26e   : > { %v2471_v49 = vand.u32 4294901760, %v2470_v63  ;;  %v2895_v42 = vand.u32 4294901760, %v1791_v44  ;;  %6640 = vmatmul.mubr.f32.vlgmr.msra.gmra.mrb[0].mxu1 %v8568_v56  ;;  %v1961_v29 = vand.u32 4294901760, %v1960_v32  ;;  %v8576_v36 = vpack.c.bf16 %v2477_v15, %v2470_v63 }
 0x26f   : > { %v2479_v43 = vsub.f32 %v2477_v15, %v2478_v38  ;;  %v2990_v25 = vsub.f32 %v6619_v23, %v2898_v26  ;;  %6646 = vmatprep.mubr.f32.mxu1 %v8541_v28 }
 0x270   : > { %v2472_v57 = vsub.f32 %v2470_v63, %v2471_v49  ;;  %v8579_v9 = vpack.c.bf16 %v2898_v26, %v2895_v42  ;;  %v2983_v58 = vsub.f32 %v1791_v44, %v2895_v42  ;;  %v6622_v11 = vpop.f32.mrb[6].mxu0  ;;  %v6999_v13 = vpack.c.bf16 %v1968_v4, %v1961_v29 }
 0x271   : > { %v2991_v34 = vand.u32 4294901760, %v2990_v25  ;;  %v3411_v14 = vand.u32 4294901760, %v6622_v11  ;;  %v1803_v18 = vpop.f32.mrb[7].mxu0  ;;  %v2480_v54 = vand.u32 4294901760, %v2479_v43  ;;  %v8581_v0 = vpack.c.bf16 %v2478_v38, %v2471_v49 }
 0x272   : > { %v2984_v1 = vand.u32 4294901760, %v2983_v58  ;;  %v3408_v19 = vand.u32 4294901760, %v1803_v18  ;;  %7000 = vmatprep.subr.bf16.mxu1 %v6999_v13  ;;  %v2473_v30 = vand.u32 4294901760, %v2472_v57  ;;  %v8583_v46 = vpack.c.bf16 %v2990_v25, %v2983_v58 }
 0x273   : > { %v2992_v35 = vsub.f32 %v2990_v25, %v2991_v34  ;;  %v3503_v61 = vsub.f32 %v6622_v11, %v3411_v14  ;;  %7002 = vmatpush3.bf16.msra.mxu1 %v6999_v13 }
 0x274   : > { %v2985_v5 = vsub.f32 %v2983_v58, %v2984_v1  ;;  %v8585_v41 = vpack.c.bf16 %v3411_v14, %v3408_v19  ;;  %v3496_v60 = vsub.f32 %v1803_v18, %v3408_v19  ;;  %v6625_v59 = vpop.f32.mrb[8].mxu0  ;;  %7004 = vmatprep.subr.bf16.mxu1 %v7003_v39  ;;  %v8587_v62 = vpack.c.bf16 %v2480_v54, %v2473_v30 }
 0x275   : > { %v3504_v40 = vand.u32 4294901760, %v3503_v61  ;;  %v3924_v21 = vand.u32 4294901760, %v6625_v59  ;;  %v1815_v16 = vpop.f32.mrb[9].mxu0  ;;  %v2993_v52 = vand.u32 4294901760, %v2992_v35  ;;  %v8589_v50 = vpack.c.bf16 %v2991_v34, %v2984_v1 }
 0x276   : > { %v3497_v7 = vand.u32 4294901760, %v3496_v60  ;;  %v3921_v2 = vand.u32 4294901760, %v1815_v16  ;;  %6647 = vmatmul.mubr.f32.vlgmr.msra.gmra.mrb[0].mxu1 %v8555_v27  ;;  %v2986_v12 = vand.u32 4294901760, %v2985_v5  ;;  %v8592_v22 = vpack.c.bf16 %v3503_v61, %v3496_v60 }
 0x277   : > { %v3505_v8 = vsub.f32 %v3503_v61, %v3504_v40  ;;  %v4016_v17 = vsub.f32 %v6625_v59, %v3924_v21  ;;  %7006 = vmatpush3.bf16.msra.mxu1 %v7003_v39  ;;  %6653 = vmatprep.mubr.f32.mxu1 %v8544_v3 }
 0x278   : > { %v3498_v37 = vsub.f32 %v3496_v60, %v3497_v7  ;;  %v8595_v47 = vpack.c.bf16 %v3924_v21, %v3921_v2  ;;  %v4009_v51 = vsub.f32 %v1815_v16, %v3921_v2  ;;  %v6628_v20 = vpop.f32.mrb[10].mxu0  ;;  %7008 = vmatprep.subr.bf16.mxu1 %v8565_v6  ;;  %v8598_v15 = vpack.c.bf16 %v2993_v52, %v2986_v12 }
 0x279   : > { %v4017_v32 = vand.u32 4294901760, %v4016_v17  ;;  %v4437_v63 = vand.u32 4294901760, %v6628_v20  ;;  %v1827_v23 = vpop.f32.mrb[11].mxu0  ;;  %v3506_v38 = vand.u32 4294901760, %v3505_v8  ;;  %v8600_v26 = vpack.c.bf16 %v3504_v40, %v3497_v7 }
 0x27a   : > { %v4010_v44 = vand.u32 4294901760, %v4009_v51  ;;  %v4434_v4 = vand.u32 4294901760, %v1827_v23  ;;  %v3499_v39 = vand.u32 4294901760, %v3498_v37  ;;  %v8602_v49 = vpack.c.bf16 %v4016_v17, %v4009_v51 }
 0x27b   : > { %v4018_v42 = vsub.f32 %v4016_v17, %v4017_v32  ;;  %v4529_v29 = vsub.f32 %v6628_v20, %v4437_v63 }
 0x27c   : > { %v4011_v43 = vsub.f32 %v4009_v51, %v4010_v44  ;;  %v8604_v25 = vpack.c.bf16 %v4437_v63, %v4434_v4  ;;  %v4522_v57 = vsub.f32 %v1827_v23, %v4434_v4  ;;  %v6631_v58 = vpop.f32.mrb[12].mxu0  ;;  %v8606_v11 = vpack.c.bf16 %v3506_v38, %v3499_v39 }
 0x27d   : > { %v4530_v13 = vand.u32 4294901760, %v4529_v29  ;;  %v4950_v34 = vand.u32 4294901760, %v6631_v58  ;;  %v1839_v14 = vpop.f32.mrb[13].mxu0  ;;  %v4019_v18 = vand.u32 4294901760, %v4018_v42  ;;  %v8608_v54 = vpack.c.bf16 %v4017_v32, %v4010_v44 }
 0x27e   : > { %v4523_v1 = vand.u32 4294901760, %v4522_v57  ;;  %v4947_v19 = vand.u32 4294901760, %v1839_v14  ;;  %6654 = vmatmul.mubr.f32.vlgmr.msra.gmra.mrb[0].mxu1 %v8558_v45  ;;  %v4012_v30 = vand.u32 4294901760, %v4011_v43  ;;  %v8611_v35 = vpack.c.bf16 %v4529_v29, %v4522_v57 }
 0x27f   : > { %v4531_v61 = vsub.f32 %v4529_v29, %v4530_v13  ;;  %v5042_v5 = vsub.f32 %v6631_v58, %v4950_v34  ;;  %7010 = vmatpush3.bf16.msra.mxu1 %v8565_v6  ;;  %6660 = vmatprep.mubr.f32.mxu1 %v8547_v24 }
 0x280   : > { %v4524_v60 = vsub.f32 %v4522_v57, %v4523_v1  ;;  %v8615_v59 = vpack.c.bf16 %v4950_v34, %v4947_v19  ;;  %v5035_v40 = vsub.f32 %v1839_v14, %v4947_v19  ;;  %7012 = vmatprep.subr.bf16.mxu1 %v8573_v10  ;;  %v6634_v21 = vpop.f32.mrb[14].mxu0  ;;  %v8618_v16 = vpack.c.bf16 %v4019_v18, %v4012_v30 }
 0x281   : > { %v5043_v52 = vand.u32 4294901760, %v5042_v5  ;;  %v5463_v7 = vand.u32 4294901760, %v6634_v21  ;;  %v1851_v2 = vpop.f32.mrb[15].mxu0  ;;  %v4532_v12 = vand.u32 4294901760, %v4531_v61  ;;  %v8620_v8 = vpack.c.bf16 %v4530_v13, %v4523_v1 }
 0x282   : > { %v5036_v17 = vand.u32 4294901760, %v5035_v40  ;;  %v5460_v37 = vand.u32 4294901760, %v1851_v2  ;;  %v4525_v51 = vand.u32 4294901760, %v4524_v60  ;;  %v8622_v20 = vpack.c.bf16 %v5042_v5, %v5035_v40 }
 0x283   : > { %v5044_v32 = vsub.f32 %v5042_v5, %v5043_v52  ;;  %v5555_v63 = vsub.f32 %v6634_v21, %v5463_v7 }
 0x284   : > { %v5037_v23 = vsub.f32 %v5035_v40, %v5036_v17  ;;  %v8624_v38 = vpack.c.bf16 %v5463_v7, %v5460_v37  ;;  %v5548_v44 = vsub.f32 %v1851_v2, %v5460_v37  ;;  %v8626_v4 = vpack.c.bf16 %v4532_v12, %v4525_v51 }
 0x285   : > { %v5556_v39 = vand.u32 4294901760, %v5555_v63  ;;  %v5045_v42 = vand.u32 4294901760, %v5044_v32  ;;  %v8628_v29 = vpack.c.bf16 %v5043_v52, %v5036_v17 }
 0x286   : > { %v5549_v43 = vand.u32 4294901760, %v5548_v44  ;;  %6661 = vmatmul.mubr.f32.vlgmr.msra.gmra.mrb[0].mxu1 %v8561_v53  ;;  %v5038_v57 = vand.u32 4294901760, %v5037_v23  ;;  %v8631_v58 = vpack.c.bf16 %v5555_v63, %v5548_v44 }
 0x287   : > { %v5557_v13 = vsub.f32 %v5555_v63, %v5556_v39  ;;  %7014 = vmatpush3.bf16.msra.mxu1 %v8573_v10  ;;  %6667 = vmatprep.mubr.f32.mxu1 %v8541_v28 }
 0x288   : > { %v5550_v34 = vsub.f32 %v5548_v44, %v5549_v43  ;;  %7016 = vmatprep.subr.bf16.mxu1 %v8565_v6  ;;  %v8636_v14 = vpack.c.bf16 %v5045_v42, %v5038_v57  ;;  %v8638_v18 = vpack.c.bf16 %v5556_v39, %v5549_v43 }
 0x289   : > { %v5558_v1 = vand.u32 4294901760, %v5557_v13 }
 0x28a   : > { %v5551_v19 = vand.u32 4294901760, %v5550_v34 }
 0x28c   : > { %v8640_v30 = vpack.c.bf16 %v5558_v1, %v5551_v19 }
 0x28e   : > { %6668 = vmatmul.mubr.f32.vlgmr.msra.gmra.mrb[0].mxu1 %v8555_v27 }
 0x28f   : > { %7018 = vmatpush3.bf16.msra.mxu1 %v8565_v6  ;;  %6674 = vmatprep.mubr.f32.mxu1 %v8541_v28 }
 0x290   : > { %7020 = vmatprep.subr.bf16.mxu1 %v8571_v55 }
 0x296   : > { %6675 = vmatmul.mubr.f32.vlgmr.msra.gmra.mrb[0].mxu1 %v8555_v27 }
 0x297   : > { %7022 = vmatpush3.bf16.msra.mxu1 %v8571_v55  ;;  %6681 = vmatprep.mubr.f32.mxu1 %v8551_v48 }
 0x298   : > { %7024 = vmatprep.subr.bf16.mxu1 %v8587_v62 }
 0x29a   : > { %6682 = vmatmul.mubr.f32.vlgmr.msra.gmra.mrb[2].mxu1 %v8568_v56 }
 0x29b   : > { %7026 = vmatpush3.bf16.msra.mxu1 %v8587_v62  ;;  %6688 = vmatprep.mubr.f32.mxu1 %v8541_v28 }
 0x29c   : > { %7028 = vmatprep.subr.bf16.mxu1 %v8576_v36 }
 0x2a2   : > { %6689 = vmatmul.mubr.f32.vlgmr.msra.gmra.mrb[2].mxu1 %v8555_v27 }
 0x2a3   : > { %7030 = vmatpush3.bf16.msra.mxu1 %v8576_v36  ;;  %6695 = vmatprep.mubr.f32.mxu1 %v8544_v3 }
 0x2a4   : > { %7032 = vmatprep.subr.bf16.mxu1 %v8571_v55 }
 0x2aa   : > { %6696 = vmatmul.mubr.f32.vlgmr.msra.gmra.mrb[2].mxu1 %v8558_v45 }
 0x2ab   : > { %7034 = vmatpush3.bf16.msra.mxu1 %v8571_v55  ;;  %6702 = vmatprep.mubr.f32.mxu1 %v8547_v24 }
 0x2ac   : > { %7036 = vmatprep.subr.bf16.mxu1 %v8581_v0 }
 0x2b2   : > { %6703 = vmatmul.mubr.f32.vlgmr.msra.gmra.mrb[2].mxu1 %v8561_v53 }
 0x2b3   : > { %7038 = vmatpush3.bf16.msra.mxu1 %v8581_v0  ;;  %6709 = vmatprep.mubr.f32.mxu1 %v8541_v28 }
 0x2b4   : > { %7040 = vmatprep.subr.bf16.mxu1 %v8571_v55 }
 0x2ba   : > { %6710 = vmatmul.mubr.f32.vlgmr.msra.gmra.mrb[2].mxu1 %v8555_v27 }
 0x2bb   : > { %7042 = vmatpush3.bf16.msra.mxu1 %v8571_v55  ;;  %6716 = vmatprep.mubr.f32.mxu1 %v8541_v28 }
 0x2bc   : > { %7044 = vmatprep.subr.bf16.mxu1 %v8579_v9 }
 0x2c2   : > { %6717 = vmatmul.mubr.f32.vlgmr.msra.gmra.mrb[2].mxu1 %v8555_v27 }
 0x2c3   : > { %7046 = vmatpush3.bf16.msra.mxu1 %v8579_v9  ;;  %6723 = vmatprep.mubr.f32.mxu1 %v8551_v48 }
 0x2c4   : > { %7048 = vmatprep.subr.bf16.mxu1 %v8598_v15 }
 0x2c6   : > { %6724 = vmatmul.mubr.f32.vlgmr.msra.gmra.mrb[4].mxu1 %v8568_v56 }
 0x2c7   : > { %7050 = vmatpush3.bf16.msra.mxu1 %v8598_v15  ;;  %6730 = vmatprep.mubr.f32.mxu1 %v8541_v28 }
 0x2c8   : > { %7052 = vmatprep.subr.bf16.mxu1 %v8583_v46 }
 0x2ce   : > { %6731 = vmatmul.mubr.f32.vlgmr.msra.gmra.mrb[4].mxu1 %v8555_v27 }
 0x2cf   : > { %7054 = vmatpush3.bf16.msra.mxu1 %v8583_v46  ;;  %6737 = vmatprep.mubr.f32.mxu1 %v8544_v3 }
 0x2d0   : > { %7056 = vmatprep.subr.bf16.mxu1 %v8579_v9 }
 0x2d6   : > { %6738 = vmatmul.mubr.f32.vlgmr.msra.gmra.mrb[4].mxu1 %v8558_v45 }
 0x2d7   : > { %7058 = vmatpush3.bf16.msra.mxu1 %v8579_v9  ;;  %6744 = vmatprep.mubr.f32.mxu1 %v8547_v24 }
 0x2d8   : > { %7060 = vmatprep.subr.bf16.mxu1 %v8589_v50 }
 0x2de   : > { %6745 = vmatmul.mubr.f32.vlgmr.msra.gmra.mrb[4].mxu1 %v8561_v53 }
 0x2df   : > { %7062 = vmatpush3.bf16.msra.mxu1 %v8589_v50  ;;  %6751 = vmatprep.mubr.f32.mxu1 %v8541_v28 }
 0x2e0   : > { %7064 = vmatprep.subr.bf16.mxu1 %v8579_v9 }
 0x2e6   : > { %6752 = vmatmul.mubr.f32.vlgmr.msra.gmra.mrb[4].mxu1 %v8555_v27 }
 0x2e7   : > { %7066 = vmatpush3.bf16.msra.mxu1 %v8579_v9  ;;  %6758 = vmatprep.mubr.f32.mxu1 %v8541_v28 }
 0x2e8   : > { %7068 = vmatprep.subr.bf16.mxu1 %v8585_v41 }
 0x2ee   : > { %6759 = vmatmul.mubr.f32.vlgmr.msra.gmra.mrb[4].mxu1 %v8555_v27 }
 0x2ef   : > { %7070 = vmatpush3.bf16.msra.mxu1 %v8585_v41  ;;  %6765 = vmatprep.mubr.f32.mxu1 %v8551_v48 }
 0x2f0   : > { %7072 = vmatprep.subr.bf16.mxu1 %v8606_v11 }
 0x2f2   : > { %6766 = vmatmul.mubr.f32.vlgmr.msra.gmra.mrb[6].mxu1 %v8568_v56 }
 0x2f3   : > { %7074 = vmatpush3.bf16.msra.mxu1 %v8606_v11  ;;  %6772 = vmatprep.mubr.f32.mxu1 %v8541_v28 }
 0x2f4   : > { %7076 = vmatprep.subr.bf16.mxu1 %v8592_v22 }
 0x2fa   : > { %6773 = vmatmul.mubr.f32.vlgmr.msra.gmra.mrb[6].mxu1 %v8555_v27 }
 0x2fb   : > { %7078 = vmatpush3.bf16.msra.mxu1 %v8592_v22  ;;  %6779 = vmatprep.mubr.f32.mxu1 %v8544_v3 }
 0x2fc   : > { %7080 = vmatprep.subr.bf16.mxu1 %v8585_v41 }
 0x302   : > { %6780 = vmatmul.mubr.f32.vlgmr.msra.gmra.mrb[6].mxu1 %v8558_v45 }
 0x303   : > { %7082 = vmatpush3.bf16.msra.mxu1 %v8585_v41  ;;  %6786 = vmatprep.mubr.f32.mxu1 %v8547_v24 }
 0x304   : > { %7084 = vmatprep.subr.bf16.mxu1 %v8600_v26 }
 0x30a   : > { %6787 = vmatmul.mubr.f32.vlgmr.msra.gmra.mrb[6].mxu1 %v8561_v53 }
 0x30b   : > { %7086 = vmatpush3.bf16.msra.mxu1 %v8600_v26  ;;  %6793 = vmatprep.mubr.f32.mxu1 %v8541_v28 }
 0x30c   : > { %7088 = vmatprep.subr.bf16.mxu1 %v8585_v41 }
 0x312   : > { %6794 = vmatmul.mubr.f32.vlgmr.msra.gmra.mrb[6].mxu1 %v8555_v27 }
 0x313   : > { %7090 = vmatpush3.bf16.msra.mxu1 %v8585_v41  ;;  %6800 = vmatprep.mubr.f32.mxu1 %v8541_v28 }
 0x314   : > { %7092 = vmatprep.subr.bf16.mxu1 %v8595_v47 }
 0x31a   : > { %6801 = vmatmul.mubr.f32.vlgmr.msra.gmra.mrb[6].mxu1 %v8555_v27 }
 0x31b   : > { %7094 = vmatpush3.bf16.msra.mxu1 %v8595_v47  ;;  %6807 = vmatprep.mubr.f32.mxu1 %v8551_v48 }
 0x31c   : > { %7096 = vmatprep.subr.bf16.mxu1 %v8618_v16 }
 0x31e   : > { %6808 = vmatmul.mubr.f32.vlgmr.msra.gmra.mrb[8].mxu1 %v8568_v56 }
 0x31f   : > { %7098 = vmatpush3.bf16.msra.mxu1 %v8618_v16  ;;  %6814 = vmatprep.mubr.f32.mxu1 %v8541_v28 }
 0x320   : > { %7100 = vmatprep.subr.bf16.mxu1 %v8602_v49 }
 0x326   : > { %6815 = vmatmul.mubr.f32.vlgmr.msra.gmra.mrb[8].mxu1 %v8555_v27 }
 0x327   : > { %7102 = vmatpush3.bf16.msra.mxu1 %v8602_v49  ;;  %6821 = vmatprep.mubr.f32.mxu1 %v8544_v3 }
 0x328   : > { %7104 = vmatprep.subr.bf16.mxu1 %v8595_v47 }
 0x32e   : > { %6822 = vmatmul.mubr.f32.vlgmr.msra.gmra.mrb[8].mxu1 %v8558_v45 }
 0x32f   : > { %7106 = vmatpush3.bf16.msra.mxu1 %v8595_v47  ;;  %6828 = vmatprep.mubr.f32.mxu1 %v8547_v24 }
 0x330   : > { %7108 = vmatprep.subr.bf16.mxu1 %v8608_v54 }
 0x336   : > { %6829 = vmatmul.mubr.f32.vlgmr.msra.gmra.mrb[8].mxu1 %v8561_v53 }
 0x337   : > { %7110 = vmatpush3.bf16.msra.mxu1 %v8608_v54  ;;  %6835 = vmatprep.mubr.f32.mxu1 %v8541_v28 }
 0x338   : > { %7112 = vmatprep.subr.bf16.mxu1 %v8595_v47 }
 0x33e   : > { %6836 = vmatmul.mubr.f32.vlgmr.msra.gmra.mrb[8].mxu1 %v8555_v27 }
 0x33f   : > { %7114 = vmatpush3.bf16.msra.mxu1 %v8595_v47  ;;  %6842 = vmatprep.mubr.f32.mxu1 %v8541_v28 }
 0x340   : > { %7116 = vmatprep.subr.bf16.mxu1 %v8604_v25 }
 0x346   : > { %6843 = vmatmul.mubr.f32.vlgmr.msra.gmra.mrb[8].mxu1 %v8555_v27 }
 0x347   : > { %7118 = vmatpush3.bf16.msra.mxu1 %v8604_v25  ;;  %6849 = vmatprep.mubr.f32.mxu1 %v8551_v48 }
 0x348   : > { %7120 = vmatprep.subr.bf16.mxu1 %v8626_v4 }
 0x34a   : > { %6850 = vmatmul.mubr.f32.vlgmr.msra.gmra.mrb[10].mxu1 %v8568_v56 }
 0x34b   : > { %7122 = vmatpush3.bf16.msra.mxu1 %v8626_v4  ;;  %6856 = vmatprep.mubr.f32.mxu1 %v8541_v28 }
 0x34c   : > { %7124 = vmatprep.subr.bf16.mxu1 %v8611_v35 }
 0x352   : > { %6857 = vmatmul.mubr.f32.vlgmr.msra.gmra.mrb[10].mxu1 %v8555_v27 }
 0x353   : > { %7126 = vmatpush3.bf16.msra.mxu1 %v8611_v35  ;;  %6863 = vmatprep.mubr.f32.mxu1 %v8544_v3 }
 0x354   : > { %7128 = vmatprep.subr.bf16.mxu1 %v8604_v25 }
 0x35a   : > { %6864 = vmatmul.mubr.f32.vlgmr.msra.gmra.mrb[10].mxu1 %v8558_v45 }
 0x35b   : > { %7130 = vmatpush3.bf16.msra.mxu1 %v8604_v25  ;;  %6870 = vmatprep.mubr.f32.mxu1 %v8547_v24 }
 0x35c   : > { %7132 = vmatprep.subr.bf16.mxu1 %v8620_v8 }
 0x362   : > { %6871 = vmatmul.mubr.f32.vlgmr.msra.gmra.mrb[10].mxu1 %v8561_v53 }
 0x363   : > { %7134 = vmatpush3.bf16.msra.mxu1 %v8620_v8  ;;  %6877 = vmatprep.mubr.f32.mxu1 %v8541_v28 }
 0x364   : > { %7136 = vmatprep.subr.bf16.mxu1 %v8604_v25 }
 0x369   : > { %v6676_v6 = vpop.f32.mrb[0].mxu1 }
 0x36a   : > { %2372 = vst.msk [vmem:[%s8013_s25 + $0x8] sm:$0xff] %vm328_vm1, %v6676_v6  ;;  %v2361_v55 = vpop.f32.mrb[1].mxu1  ;;  %6878 = vmatmul.mubr.f32.vlgmr.msra.gmra.mrb[10].mxu1 %v8555_v27 }
 0x36b   : > { %2371 = vst.msk [vmem:[%s8013_s25] sm:$0xff] %vm328_vm1, %v2361_v55  ;;  %7138 = vmatpush3.bf16.msra.mxu1 %v8604_v25  ;;  %6884 = vmatprep.mubr.f32.mxu1 %v8541_v28 }
 0x36c   : > { %7140 = vmatprep.subr.bf16.mxu1 %v8615_v59 }
 0x372   : > { %6885 = vmatmul.mubr.f32.vlgmr.msra.gmra.mrb[10].mxu1 %v8555_v27 }
 0x373   : > { %7142 = vmatpush3.bf16.msra.mxu1 %v8615_v59  ;;  %6891 = vmatprep.mubr.f32.mxu1 %v8551_v48 }
 0x374   : > { %7144 = vmatprep.subr.bf16.mxu1 %v8636_v14 }
 0x376   : > { %6892 = vmatmul.mubr.f32.vlgmr.msra.gmra.mrb[12].mxu1 %v8568_v56 }
 0x377   : > { %7146 = vmatpush3.bf16.msra.mxu1 %v8636_v14  ;;  %6898 = vmatprep.mubr.f32.mxu1 %v8541_v28 }
 0x378   : > { %7148 = vmatprep.subr.bf16.mxu1 %v8622_v20 }
 0x37e   : > { %6899 = vmatmul.mubr.f32.vlgmr.msra.gmra.mrb[12].mxu1 %v8555_v27 }
 0x37f   : > { %7150 = vmatpush3.bf16.msra.mxu1 %v8622_v20  ;;  %6905 = vmatprep.mubr.f32.mxu1 %v8544_v3 }
 0x380   : > { %7152 = vmatprep.subr.bf16.mxu1 %v8615_v59 }
 0x386   : > { %6906 = vmatmul.mubr.f32.vlgmr.msra.gmra.mrb[12].mxu1 %v8558_v45 }
 0x387   : > { %7154 = vmatpush3.bf16.msra.mxu1 %v8615_v59  ;;  %6912 = vmatprep.mubr.f32.mxu1 %v8547_v24 }
 0x388   : > { %7156 = vmatprep.subr.bf16.mxu1 %v8628_v29 }
 0x38e   : > { %6913 = vmatmul.mubr.f32.vlgmr.msra.gmra.mrb[12].mxu1 %v8561_v53 }
 0x38f   : > { %7158 = vmatpush3.bf16.msra.mxu1 %v8628_v29  ;;  %6919 = vmatprep.mubr.f32.mxu1 %v8541_v28 }
 0x390   : > { %7160 = vmatprep.subr.bf16.mxu1 %v8615_v59 }
 0x395   : > { %v6718_v10 = vpop.f32.mrb[2].mxu1 }
 0x396   : > { %6144 = vst.msk [vmem:[%s8013_s25 + $0x18] sm:$0xff] %vm328_vm1, %v6718_v10  ;;  %v2873_v36 = vpop.f32.mrb[3].mxu1  ;;  %6920 = vmatmul.mubr.f32.vlgmr.msra.gmra.mrb[12].mxu1 %v8555_v27 }
 0x397   : > { %6143 = vst.msk [vmem:[%s8013_s25 + $0x10] sm:$0xff] %vm328_vm1, %v2873_v36  ;;  %7162 = vmatpush3.bf16.msra.mxu1 %v8615_v59  ;;  %6926 = vmatprep.mubr.f32.mxu1 %v8541_v28 }
 0x398   : > { %7164 = vmatprep.subr.bf16.mxu1 %v8624_v38 }
 0x39e   : > { %6927 = vmatmul.mubr.f32.vlgmr.msra.gmra.mrb[12].mxu1 %v8555_v27 }
 0x39f   : > { %7166 = vmatpush3.bf16.msra.mxu1 %v8624_v38  ;;  %6933 = vmatprep.mubr.f32.mxu1 %v8551_v48 }
 0x3a0   : > { %7168 = vmatprep.subr.bf16.mxu1 %v8640_v30 }
 0x3a2   : > { %6934 = vmatmul.mubr.f32.vlgmr.msra.gmra.mrb[14].mxu1 %v8568_v56 }
 0x3a3   : > { %7170 = vmatpush3.bf16.msra.mxu1 %v8640_v30  ;;  %6940 = vmatprep.mubr.f32.mxu1 %v8541_v28 }
 0x3a4   : > { %7172 = vmatprep.subr.bf16.mxu1 %v8631_v58 }
 0x3aa   : > { %6941 = vmatmul.mubr.f32.vlgmr.msra.gmra.mrb[14].mxu1 %v8555_v27 }
 0x3ab   : > { %7174 = vmatpush3.bf16.msra.mxu1 %v8631_v58  ;;  %6947 = vmatprep.mubr.f32.mxu1 %v8544_v3 }
 0x3ac   : > { %7176 = vmatprep.subr.bf16.mxu1 %v8624_v38 }
 0x3b2   : > { %6948 = vmatmul.mubr.f32.vlgmr.msra.gmra.mrb[14].mxu1 %v8558_v45 }
 0x3b3   : > { %7178 = vmatpush3.bf16.msra.mxu1 %v8624_v38  ;;  %6954 = vmatprep.mubr.f32.mxu1 %v8547_v24 }
 0x3b4   : > { %7180 = vmatprep.subr.bf16.mxu1 %v8638_v18 }
 0x3ba   : > { %6955 = vmatmul.mubr.f32.vlgmr.msra.gmra.mrb[14].mxu1 %v8561_v53 }
 0x3bb   : > { %7182 = vmatpush3.bf16.msra.mxu1 %v8638_v18  ;;  %6961 = vmatprep.mubr.f32.mxu1 %v8541_v28 }
 0x3bc   : > { %7184 = vmatprep.subr.bf16.mxu1 %v8624_v38 }
 0x3c1   : > { %v6760_v3 = vpop.f32.mrb[4].mxu1 }
 0x3c2   : > { %6146 = vst.msk [vmem:[%s8013_s25 + $0x28] sm:$0xff] %vm328_vm1, %v6760_v3  ;;  %v3386_v48 = vpop.f32.mrb[5].mxu1  ;;  %6962 = vmatmul.mubr.f32.vlgmr.msra.gmra.mrb[14].mxu1 %v8555_v27 }
 0x3c3   : > { %6145 = vst.msk [vmem:[%s8013_s25 + $0x20] sm:$0xff] %vm328_vm1, %v3386_v48  ;;  %7186 = vmatpush3.bf16.msra.mxu1 %v8624_v38  ;;  %6968 = vmatprep.mubr.f32.mxu1 %v8541_v28 }
 0x3ca   : > { %6969 = vmatmul.mubr.f32.vlgmr.msra.gmra.mrb[14].mxu1 %v8555_v27 }
 0x3ed   : > { %v6802_v24 = vpop.f32.mrb[6].mxu1 }
 0x3ee   : > { %6148 = vst.msk [vmem:[%s8013_s25 + $0x38] sm:$0xff] %vm328_vm1, %v6802_v24  ;;  %v3899_v45 = vpop.f32.mrb[7].mxu1 }
 0x3ef   : > { %6147 = vst.msk [vmem:[%s8013_s25 + $0x30] sm:$0xff] %vm328_vm1, %v3899_v45 }
 0x419   : > { %v6844_v53 = vpop.f32.mrb[8].mxu1 }
 0x41a   : > { %6150 = vst.msk [vmem:[%s8013_s25 + $0x48] sm:$0xff] %vm328_vm1, %v6844_v53  ;;  %v4412_v56 = vpop.f32.mrb[9].mxu1 }
 0x41b   : > { %6149 = vst.msk [vmem:[%s8013_s25 + $0x40] sm:$0xff] %vm328_vm1, %v4412_v56 }
 0x445   : > { %v6886_v9 = vpop.f32.mrb[10].mxu1 }
 0x446   : > { %6152 = vst.msk [vmem:[%s8013_s25 + $0x58] sm:$0xff] %vm328_vm1, %v6886_v9  ;;  %v4925_v28 = vpop.f32.mrb[11].mxu1 }
 0x447   : > { %6151 = vst.msk [vmem:[%s8013_s25 + $0x50] sm:$0xff] %vm328_vm1, %v4925_v28 }
 0x471   : > { %v6928_v27 = vpop.f32.mrb[12].mxu1 }
 0x472   : > { %6154 = vst.msk [vmem:[%s8013_s25 + $0x68] sm:$0xff] %vm328_vm1, %v6928_v27  ;;  %v5438_v0 = vpop.f32.mrb[13].mxu1 }
 0x473   : > { %6153 = vst.msk [vmem:[%s8013_s25 + $0x60] sm:$0xff] %vm328_vm1, %v5438_v0 }
 0x49d   : > { %v6970_v46 = vpop.f32.mrb[14].mxu1 }
 0x49e   : > { %6156 = vst.msk [vmem:[%s8013_s25 + $0x78] sm:$0xff] %vm328_vm1, %v6970_v46  ;;  %v5951_v41 = vpop.f32.mrb[15].mxu1 }
 0x49f   : > { %6155 = vst.msk [vmem:[%s8013_s25 + $0x70] sm:$0xff] %vm328_vm1, %v5951_v41 }
 0x4a0 PF: > { %vm5977_vm2 = vcmask 130048   ;;  %s6158_s1 = sadd.s32 4294967295, %s7671_s18  ;;  %v9035_v62 = vld [vmem:[#allocation23_spill] sm:$0xff]  ;;  %s9036_s2 = sld [smem:[#allocation16_spill]]  ;;  %v9037_v50 = vld [vmem:[#allocation24_spill] sm:$0xff]  ;;  %v9038_v22 = vld [vmem:[#allocation25_spill] sm:$0xff] }
 0x4a1   : > { %5978 = vst.msk [vmem:[#allocation2] sm:$0xff] %vm5977_vm2, %v7980_v31  ;;  %5979 = vst.msk [vmem:[#allocation2 + $0x8] sm:$0xff] %vm5977_vm2, %v7982_v33  ;;  %v9039_v47 = vld [vmem:[#allocation26_spill] sm:$0xff]  ;;  %v9040_v15 = vld [vmem:[#allocation27_spill] sm:$0xff]  ;;  %s9048_s18 = sld [smem:[#allocation18_spill]]  ;;  %p6003_p4 = scmp.gt.s32.totalorder %s6158_s1, 0 }
 0x4a2   : > { %5980 = vst.msk [vmem:[#allocation2 + $0x10] sm:$0xff] %vm5977_vm2, %v9035_v62  ;;  %5981 = vst.msk [vmem:[#allocation2 + $0x18] sm:$0xff] %vm5977_vm2, %v9037_v50  ;;  %v9041_v31 = vld [vmem:[#allocation28_spill] sm:$0xff]  ;;  %v9042_v33 = vld [vmem:[#allocation29_spill] sm:$0xff]  ;;  %s6014_s10 = sshll.u32 %s8013_s25, 4  ;;  %s9051_s4 = sld [smem:[#allocation39_spill]]  ;;  %s8881_s10 = int_to_ptr.vmem [resolvable:$true] %s6014_s10 }
 0x4a3   : > { %5982 = vst.msk [vmem:[#allocation2 + $0x20] sm:$0xff] %vm5977_vm2, %v9038_v22  ;;  %5983 = vst.msk [vmem:[#allocation2 + $0x28] sm:$0xff] %vm5977_vm2, %v9039_v47  ;;  %v9043_v26 = vld [vmem:[#allocation30_spill] sm:$0xff]  ;;  %v9044_v49 = vld [vmem:[#allocation31_spill] sm:$0xff]  ;;  %s9080_s1 = smov (!%p6003_p4, %s6158_s1), 0  ;;  %s8890_s26 = scalar_lea.sflag [#allocation7], %s246_s19 }
 0x4a4   : > { %5984 = vst.msk [vmem:[#allocation2 + $0x30] sm:$0xff] %vm5977_vm2, %v9040_v15  ;;  %5985 = vst.msk [vmem:[#allocation2 + $0x38] sm:$0xff] %vm5977_vm2, %v9041_v31  ;;  %v9045_v25 = vld [vmem:[#allocation32_spill] sm:$0xff]  ;;  %v9046_v11 = vld [vmem:[#allocation33_spill] sm:$0xff]  ;;  %s6166_s6 = sshll.u32 %s9080_s1, 4  ;;  %s7561_s23 = scalar_lea.vmem %s8881_s10, 2048 }
 0x4a5   : > { %5986 = vst.msk [vmem:[#allocation2 + $0x40] sm:$0xff] %vm5977_vm2, %v9042_v33  ;;  %5987 = vst.msk [vmem:[#allocation2 + $0x48] sm:$0xff] %vm5977_vm2, %v9043_v26  ;;  %v9047_v54 = vld [vmem:[#allocation34_spill] sm:$0xff]  ;;  %v9049_v35 = vld [vmem:[#allocation35_spill] sm:$0xff]  ;;  %p7562_p5 = scmp.ne.s32.totalorder %s8881_s10, %s7561_s23  ;;  %s7695_s7 = smov [#allocation11]  }
 0x4a6   : > { %5988 = vst.msk [vmem:[#allocation2 + $0x50] sm:$0xff] %vm5977_vm2, %v9044_v49  ;;  %5989 = vst.msk [vmem:[#allocation2 + $0x58] sm:$0xff] %vm5977_vm2, %v9045_v25  ;;  %v9050_v61 = vld [vmem:[#allocation36_spill] sm:$0xff]  ;;  %s6161_s28 = sshll.u32 %s9036_s2, 5  ;;  %s7565_s5 = sshll.u32 %s7695_s7, 4  ;;  %s7566_s5 = int_to_ptr.vmem [resolvable:$false] %s7565_s5 }
 0x4a7   : > { %5990 = vst.msk [vmem:[#allocation2 + $0x60] sm:$0xff] %vm5977_vm2, %v9046_v11  ;;  %5991 = vst.msk [vmem:[#allocation2 + $0x68] sm:$0xff] %vm5977_vm2, %v9047_v54  ;;  %s6011_s15 = sadd.s32 %s6166_s6, %s6161_s28  ;;  %p9052_p6 = scmp.ne.s32.totalorder %s9048_s18, 0 }
 0x4a8   : > { %5992 = vst.msk [vmem:[#allocation2 + $0x70] sm:$0xff] %vm5977_vm2, %v9049_v35  ;;  %5993 = vst.msk [vmem:[#allocation2 + $0x78] sm:$0xff] %vm5977_vm2, %v9050_v61  ;;  %s6162_s8 = sshll.u32 %s6011_s15, 7  ;;  %s7567_s11 = scalar_lea.vmem %s7566_s5, 4096 }
 0x4a9   : > { %s8886_s12 = scalar_lea.hbm %s9051_s4, %s6162_s8  ;;  %p7563_p8 = pnand %p7562_p5, %p9052_p6 }
 0x4aa   : > { %p7568_p1 = scmp.lt.s32.totalorder %s8881_s10, %s7566_s5  ;;  %p7569_p7 = scmp.lt.s32.totalorder %s7567_s11, %s7561_s23 }
 0x4ab   : > { %p7564_p12 = pneg %p7563_p8 }
 0x4ac   : > { %p7570_p9 = por %p7569_p7, %p7568_p1 }
 0x4ae   : > { %p7571_p2 = pnand %p7570_p9, %p7564_p12 }
 0x4b0   : > { %7574 = shalt.err (!%p7571_p2)
}
 0x4b1   : > { %s7575_s20 = scalar_lea.hbm %s8886_s12, 2048  ;;  %s7579_s25 = scalar_lea.hbm %s9051_s4, 8192 }
 0x4b2   : > { %p7576_p3 = scmp.ne.s32.totalorder %s8886_s12, %s7575_s20  ;;  %p7580_p13 = scmp.lt.u32.totalorder %s8886_s12, %s9051_s4 }
 0x4b3   : > { %p7581_p0 = scmp.lt.u32.totalorder %s7579_s25, %s7575_s20  ;;  %p7583_p5 = scmp.lt.u32.totalorder %s7575_s20, %s8886_s12 }
 0x4b4   : > { %p7577_p11 = pnand %p7576_p3, %p9052_p6 }
 0x4b5   : > { %p7582_p4 = por %p7581_p0, %p7580_p13 }
 0x4b6   : > { %p7578_p10 = pneg %p7577_p11 }
 0x4b7   : > { %p7584_p8 = por %p7583_p5, %p7582_p4 }
 0x4b9   : > { %p7585_p12 = pnand %p7584_p8, %p7578_p10 }
 0x4bb   : > { %7588 = shalt.err (!%p7585_p12)
}
 0x4bc   : > { %s7696_s1 = smov 128   ;;  %s7697_s2 = smov 8  }
 0x4bd   : > { %7357 = dma.vmem_to_hbm [thread:$0]  (%p9052_p6), %s8881_s10, 2048, %s8886_s12, %s8890_s26, %s7696_s1, %s7696_s1, %s7697_s2  }
 0x4be PF: > { %s9053_s28 = sld [smem:[#allocation15_spill]]  ;;  %s9054_s6 = sld [smem:[#allocation19_spill]] }
 0x4bf   : > { %p7379_p1 = scmp.ge.s32.totalorder %s7687_s22, 2 }
 0x4c4   : > { %s6029_s15 = sand.u32 1, %s9053_s28   ;;  %p9055_p7 = scmp.ne.s32.totalorder %s9054_s6, 0 }
 0x4c5   : > { %s6030_s8 = scalar_lea.sflag [#allocation7], %s6029_s15 }
 0x4c6   : > { %p7371_p9 = pnand %p7379_p1, %p9055_p7 }
 0x4c8   : > { %7642 = dma.done.wait (!%p7371_p9), %s6030_s8, 2048  }
 0x4c9   : > { %7644 = vsyncadd (!%p7371_p9), %s6030_s8, 4294965248  ;;  %s20_s22 = sadd.s32 1, %s7687_s22   ;;  %s9056_s18 = sld [smem:[#allocation22_spill]] }
 0x4ca   : > { %p17_p2 = scmp.ge.s32.totalorder %s20_s22, 8   ;;  %s9057_s10 = sld [smem:[#allocation17_spill]] }
 0x4cb   : > { %s9058_s20 = sld [smem:[#allocation20_spill]]  ;;  %s9059_s9 = sld [smem:[#allocation21_spill]] }
 0x4cc   : > { %s9060_s12 = smov %s7651_s13  ;;  %s9061_s13 = smov %s7655_s14 }
 0x4cd   : > { %s9062_s14 = smov %s7898_s3  ;;  %s9063_s15 = smov %s7663_s16 }
 0x4ce   : > { %s9064_s16 = smov %s7667_s17  ;;  %s9067_s19 = smov %s7683_s21 }
 0x4cf   : > { %s9065_s17 = smov %s9056_s18  ;;  %19 = sbr.rel (!%p17_p2) target bundleno = 14 (0xe), region = 108 }
 0x4d0   : > { %s9066_s18 = smov %s9057_s10 }
 0x4d1   : > { %s9068_s21 = smov %s9059_s9 }
 0x4d6   :  { %6035 = vsyncpa [#allocation6], 1 }
 0x4d7   :  { %6037 = vsyncpa [#allocation6 + $0x1], 1 }
 0x4d8   :  { %6038 = vsyncpa [#allocation9], 1 }
 0x4d9   :  { %6039 = vsyncpa [#allocation7], 1 }
 0x4da   :  { %6041 = vsyncpa [#allocation7 + $0x1], 1 }

</bundles_post_ra>
